<compile_context>
chip_gen: v7x
topology: tpu7x:2x2x1
jax: 0.10.0
libtpu: 0.0.40
codegen_flags: <defaults>
</compile_context>

<pallas_src>
import functools

import jax
import jax.numpy as jnp
from jax.experimental import pallas as pl
from jax.experimental.pallas import tpu as pltpu

SIGMA_0 = 1.0
SIGMA_1 = 1e-7
MATMUL_DTYPE = jnp.bfloat16      # MXU operand dtype (accumulation stays f32)
VT_DTYPE = jnp.bfloat16          # v_t HBM dtype (perf review: bf16 outputs)
UT_DTYPE = jnp.float32           # u_t stays f32 -> exact x_0 recovery downstream
_MAX_T_TILE = 8192               # lane-dense time-tile upper bound (multiple of 128)
_VMEM_BLOCK_BUDGET = 8 << 20     # soft cap on double-buffered per-step block bytes

_HAS_ONCHIP_NORMAL = hasattr(pltpu, "prng_seed") and hasattr(pltpu, "stateful_normal")
_FALLBACK_ERRORS = tuple(
    e for e in (getattr(pltpu, "LoweringException", None),
                NotImplementedError, TypeError, AttributeError)
    if e is not None)


def _bf16_vpu_available():
    """v6e/v7x have bf16 VPU/EUP; keep f32 elementwise math on v5e."""
    try:
        kind = jax.devices()[0].device_kind.lower()
    except Exception:
        return True
    return "v5" not in kind


# --------------------------------------------------------------------------- #
# Kernel bodies
# --------------------------------------------------------------------------- #

def _cfm_compute(t, x1, x0, cbias, w1t, w2t, b2, vt_ref, ut_ref,
                 *, sigma_0, sigma_1, gelu_bf16):
    """Shared per-block math, channels-first orientation (T on the lane axis).

    x1, x0 : (C, TT) f32       cbias : (H, 1) f32       b2 : (C, 1) f32
    w1t    : (H, C)  bf16      w2t   : (C, H) bf16
    """
    sig_t = sigma_0 - (sigma_0 - sigma_1) * t
    # phi_t: x_t = sigma_t(t) * x_0 + t * x_1
    x_t = sig_t * x0 + t * x1                                              # (C, TT)
    # target field: u_t = x_1 - (sigma_0 - sigma_1) * x_0   (lane-dense store)
    ut_ref[...] = (x1 - (sigma_0 - sigma_1) * x0).astype(ut_ref.dtype)

    # synthetic conditional vector-field module (MXU, T stays on the lane axis)
    h = jnp.dot(w1t, x_t.astype(w1t.dtype),
                preferred_element_type=jnp.float32)                       # (H, TT)
    if gelu_bf16:
        # v6e/v7x: halve vreg / VALU / EUP work on the largest intermediate
        h = jax.nn.gelu(h.astype(jnp.bfloat16) + cbias.astype(jnp.bfloat16),
                        approximate=True)
    else:
        # v5e: VPU/EUP have no bf16 path
        h = jax.nn.gelu(h + cbias, approximate=True)
    v = jnp.dot(w2t, h.astype(w2t.dtype),
                preferred_element_type=jnp.float32)                       # (C, TT)
    vt_ref[...] = (v + b2).astype(vt_ref.dtype)


def _mixed_seed(seed, idx):
    """Knuth multiplicative hash; decorrelates per-block hardware PRNG streams."""
    k = jnp.int32(-1640531527)          # 2654435761 reinterpreted as int32
    return (seed ^ (idx * k)) * k + jnp.int32(0x632B)


def _cfm_kernel_onchip(seed_ref, ts_ref, x1_ref, cbias_ref, w1t_ref, w2t_ref, b2_ref,
                       vt_ref, ut_ref, *, sigma_0, sigma_1, gelu_bf16):
    """Gaussian noise generated on-chip with the hardware PRNG."""
    b = pl.program_id(0)
    ti = pl.program_id(1)
    t = ts_ref[b]
    # independent, deterministic stream per (batch, T-tile) block.
    # NOTE: the noise realization depends on the tiling (TT); retuning the tile
    # size changes the realization (documented non-reproducibility).
    idx = b * pl.num_programs(1) + ti
    pltpu.prng_seed(_mixed_seed(seed_ref[0], idx))
    x0 = sigma_0 * pltpu.stateful_normal(x1_ref.shape, jnp.float32)
    _cfm_compute(t, x1_ref[...], x0, cbias_ref[...], w1t_ref[...], w2t_ref[...],
                 b2_ref[...], vt_ref, ut_ref,
                 sigma_0=sigma_0, sigma_1=sigma_1, gelu_bf16=gelu_bf16)


def _cfm_kernel_extnoise(ts_ref, x1_ref, x0_ref, cbias_ref, w1t_ref, w2t_ref, b2_ref,
                         vt_ref, ut_ref, *, sigma_0, sigma_1, gelu_bf16):
    """Compatibility path: noise supplied by the wrapper (same layout)."""
    t = ts_ref[pl.program_id(0)]
    _cfm_compute(t, x1_ref[...], x0_ref[...], cbias_ref[...], w1t_ref[...],
                 w2t_ref[...], b2_ref[...], vt_ref, ut_ref,
                 sigma_0=sigma_0, sigma_1=sigma_1, gelu_bf16=gelu_bf16)


# --------------------------------------------------------------------------- #
# Tiling
# --------------------------------------------------------------------------- #

def _round_up(x, m):
    return -(-x // m) * m


def _largest_divisor_leq(n, cap):
    d = max(1, min(cap, n))
    while n % d:
        d -= 1
    return d


def _pick_t_tile(T_pad, B, C, max_tile=_MAX_T_TILE):
    """T_pad is a multiple of 128.  Returns (TT, n_t) with TT * n_t == T_pad,
    TT a multiple of 128, TT <= VMEM-capped max_tile, and (when possible)
    B * n_t >= 2 so both v7x TensorCores get at least one grid step."""
    # per-T-column bytes, double-buffered: x1(f32) + x0(f32) + v_t(bf16) + u_t(f32)
    bytes_per_col = 2 * C * (4 + 4 + 2 + 4)
    vmem_cap = max(128, (_VMEM_BLOCK_BUDGET // bytes_per_col) // 128 * 128)
    max_units = max(1, min(max_tile, vmem_cap) // 128)

    n128 = T_pad // 128
    d = _largest_divisor_leq(n128, max_units)
    if B * (n128 // d) < 2 and n128 >= 2:      # keep both v7x cores busy
        d = _largest_divisor_leq(n128, n128 // 2)
    return d * 128, n128 // d


# --------------------------------------------------------------------------- #
# Wrapper
# --------------------------------------------------------------------------- #

def conditional_flow_matcher_forward(x_1, x_cond, timestep, params, noise_key):
    """ConditionalFlowMatcher.forward.  PyTorch layout is kept throughout:
    x_1: (B, C, T) f32, x_cond: (B,) int32, timestep: (B,) f32.
    Returns (v_t, u_t): v_t (B, C, T) bf16, u_t (B, C, T) f32."""
    B, C, T = x_1.shape
    H = params["w1"].shape[1]

    # pad T to a multiple of 128 so output stores stay unmasked / lane-dense
    T_pad = _round_up(T, 128)
    x1 = x_1.astype(jnp.float32)
    if T_pad != T:
        x1 = jnp.pad(x1, ((0, 0), (0, 0), (0, T_pad - T)))
    TT, n_t = _pick_t_tile(T_pad, B, C)

    ts = timestep.astype(jnp.float32)                                     # (B,)
    # precomputed per-batch hidden bias: b1 + emb[x_cond] + t * t_vec -> (B, H, 1)
    cbias = (params["b1"][None, :] + params["emb"][x_cond]
             + ts[:, None] * params["t_vec"][None, :])[:, :, None].astype(jnp.float32)
    w1t = params["w1"].T.astype(MATMUL_DTYPE)                             # (H, C)
    w2t = params["w2"].T.astype(MATMUL_DTYPE)                             # (C, H)
    b2 = params["b2"].astype(jnp.float32)[:, None]                        # (C, 1)

    gelu_bf16 = _bf16_vpu_available()

    def x_block():
        return pl.BlockSpec((None, C, TT), lambda b, i: (b, 0, i))

    fixed_specs = [
        pl.BlockSpec((None, H, 1), lambda b, i: (b, 0, 0)),               # cond/time bias
        pl.BlockSpec((H, C), lambda b, i: (0, 0)),                        # W1^T (resident)
        pl.BlockSpec((C, H), lambda b, i: (0, 0)),                        # W2^T (resident)
        pl.BlockSpec((C, 1), lambda b, i: (0, 0)),                        # b2   (resident)
    ]
    call_kwargs = dict(
        grid=(B, n_t),
        out_specs=[x_block(), x_block()],
        out_shape=[jax.ShapeDtypeStruct((B, C, T_pad), VT_DTYPE),         # v_t
                   jax.ShapeDtypeStruct((B, C, T_pad), UT_DTYPE)],        # u_t
        compiler_params=pltpu.CompilerParams(
            dimension_semantics=("parallel", "parallel")),
    )

    def _run_onchip_noise():
        seed = jax.random.randint(noise_key, (1,), 0, 2 ** 30, dtype=jnp.int32)
        kernel = functools.partial(_cfm_kernel_onchip, sigma_0=SIGMA_0,
                                   sigma_1=SIGMA_1, gelu_bf16=gelu_bf16)
        return pl.pallas_call(
            kernel,
            in_specs=[pl.BlockSpec(memory_space=pltpu.MemorySpace.SMEM),  # seed
                      pl.BlockSpec(memory_space=pltpu.MemorySpace.SMEM),  # timesteps
                      x_block()] + fixed_specs,                           # x_1 + params
            **call_kwargs,
        )(seed, ts, x1, cbias, w1t, w2t, b2)

    def _run_external_noise():
        x0 = jax.random.normal(noise_key, x1.shape, jnp.float32) * SIGMA_0
        kernel = functools.partial(_cfm_kernel_extnoise, sigma_0=SIGMA_0,
                                   sigma_1=SIGMA_1, gelu_bf16=gelu_bf16)
        return pl.pallas_call(
            kernel,
            in_specs=[pl.BlockSpec(memory_space=pltpu.MemorySpace.SMEM),  # timesteps
                      x_block(), x_block()] + fixed_specs,                # x_1, x_0 + params
            **call_kwargs,
        )(ts, x1, x0, cbias, w1t, w2t, b2)

    if _HAS_ONCHIP_NORMAL:
        try:
            v_t, u_t = _run_onchip_noise()
        except _FALLBACK_ERRORS:
            # Narrow fallback: only API-signature / lowering mismatches on older
            # jax versions switch to wrapper-generated noise.
            v_t, u_t = _run_external_noise()
    else:
        v_t, u_t = _run_external_noise()

    if T_pad != T:
        v_t = v_t[..., :T]
        u_t = u_t[..., :T]
    return v_t, u_t


# --------------------------------------------------------------------------- #
# Reference, params, demo
# --------------------------------------------------------------------------- #

def _reference_forward_from_noise(x_1, x_0, x_cond, timestep, params):
    """Pure-JAX reference (f32) given an explicit noise realization x_0."""
    t = timestep.astype(jnp.float32)[:, None, None]
    sig_t = SIGMA_0 - (SIGMA_0 - SIGMA_1) * t
    x_t = sig_t * x_0 + t * x_1
    u_t = x_1 - (SIGMA_0 - SIGMA_1) * x_0
    h = jnp.einsum("bct,ch->bht", x_t, params["w1"])
    h = h + (params["b1"][None, :] + params["emb"][x_cond]
             + timestep.astype(jnp.float32)[:, None] * params["t_vec"][None, :])[:, :, None]
    h = jax.nn.gelu(h, approximate=True)
    v = jnp.einsum("bht,hc->bct", h, params["w2"]) + params["b2"][None, :, None]
    return v, u_t


def init_params(key, C, H, num_cond):
    k1, k2, k3, k4, k5, k6 = jax.random.split(key, 6)
    return {
        "w1": jax.random.normal(k1, (C, H), jnp.float32) / jnp.sqrt(C),
        "b1": jax.random.normal(k2, (H,), jnp.float32) * 0.01,
        "w2": jax.random.normal(k3, (H, C), jnp.float32) / jnp.sqrt(H),
        "b2": jax.random.normal(k4, (C,), jnp.float32) * 0.01,
        "t_vec": jax.random.normal(k5, (H,), jnp.float32),
        "emb": jax.random.normal(k6, (num_cond, H), jnp.float32),
    }


if __name__ == "__main__":
    B, C, T, H, NUM_COND = 2, 8, 1024, 32, 10

    root = jax.random.PRNGKey(0)
    k_params, k_x1, k_cond, k_t, k_noise = jax.random.split(root, 5)

    params = init_params(k_params, C, H, NUM_COND)
    x_1 = jax.random.normal(k_x1, (B, C, T), jnp.float32)       # PyTorch (B, C, T) layout
    x_cond = jax.random.randint(k_cond, (B,), 0, NUM_COND, jnp.int32)
    timestep = jax.random.uniform(k_t, (B,), jnp.float32)

    v_t, u_t = conditional_flow_matcher_forward(x_1, x_cond, timestep, params, k_noise)
    v_t, u_t = jax.block_until_ready((v_t, u_t))
    assert v_t.shape == (B, C, T) and u_t.shape == (B, C, T)

    # recover x_0 from u_t = x_1 - (sigma_0 - sigma_1) * x_0 (u_t stored in f32,
    # so the identity is exact) and validate v_t against the pure-JAX reference
    # driven by the same noise realization.
    u_t = u_t.astype(jnp.float32)
    x_0 = (x_1 - u_t) / (SIGMA_0 - SIGMA_1)
    z = x_0 / SIGMA_0
    assert abs(float(jnp.mean(z))) < 0.05 and abs(float(jnp.std(z)) - 1.0) < 0.05, \
        "gaussian noise statistics look wrong"

    v_ref, u_ref = _reference_forward_from_noise(x_1, x_0, x_cond, timestep, params)
    assert jnp.allclose(u_t, u_ref, atol=1e-5, rtol=1e-5)
    # bf16 MXU operands / bf16 GELU / bf16 v_t store -> loosened v_t tolerance
    v_f32 = v_t.astype(jnp.float32)
    assert jnp.allclose(v_f32, v_ref, atol=1e-1, rtol=5e-2), \
        float(jnp.max(jnp.abs(v_f32 - v_ref)))

    print("KERNEL_OK")
</pallas_src>

<mosaic_0001>
module attributes {stable_mosaic.version = 11 : i64} {
  func.func @_cfm_kernel_onchip(%arg0: i32, %arg1: i32, %arg2: memref<1xi32, #tpu.memory_space<smem>>, %arg3: memref<2xf32, #tpu.memory_space<smem>>, %arg4: memref<1x8x1024xf32, #tpu.memory_space<vmem>>, %arg5: memref<1x32x1xf32, #tpu.memory_space<vmem>>, %arg6: memref<32x8xbf16, #tpu.memory_space<vmem>>, %arg7: memref<8x32xbf16, #tpu.memory_space<vmem>>, %arg8: memref<8x1xf32, #tpu.memory_space<vmem>>, %arg9: memref<1x8x1024xbf16, #tpu.memory_space<vmem>>, %arg10: memref<1x8x1024xf32, #tpu.memory_space<vmem>>) attributes {dimension_semantics = [#tpu.dimension_semantics<parallel>, #tpu.dimension_semantics<parallel>], iteration_bounds = array<i64: 2, 1>, scalar_prefetch = 0 : i64, scratch_operands = 0 : i64, tpu.core_type = #tpu.core_type<tc>, window_params = [{transform_indices = @transform_0, window_bounds = array<i64: 1>}, {transform_indices = @transform_1, window_bounds = array<i64: 2>}, {transform_indices = @transform_2, window_bounds = array<i64: 1, 8, 1024>}, {transform_indices = @transform_3, window_bounds = array<i64: 1, 32, 1>}, {pipeline_mode = #tpu.pipeline_mode<synchronous>, transform_indices = @transform_4, window_bounds = array<i64: 32, 8>}, {pipeline_mode = #tpu.pipeline_mode<synchronous>, transform_indices = @transform_5, window_bounds = array<i64: 8, 32>}, {pipeline_mode = #tpu.pipeline_mode<synchronous>, transform_indices = @transform_6, window_bounds = array<i64: 8, 1>}, {transform_indices = @transform_7, window_bounds = array<i64: 1, 8, 1024>}, {transform_indices = @transform_8, window_bounds = array<i64: 1, 8, 1024>}]} {
    %0 = arith.index_cast %arg0 : i32 to index
    %1 = memref.load %arg3[%0] : memref<2xf32, #tpu.memory_space<smem>>
    %c1_i32 = arith.constant 1 : i32
    %2 = arith.muli %arg0, %c1_i32 : i32
    %3 = arith.addi %2, %arg1 : i32
    %c0 = arith.constant 0 : index
    %4 = memref.load %arg2[%c0] : memref<1xi32, #tpu.memory_space<smem>>
    %c-1640531527_i32 = arith.constant -1640531527 : i32
    %5 = arith.muli %3, %c-1640531527_i32 : i32
    %6 = arith.xori %4, %5 : i32
    %c-1640531527_i32_0 = arith.constant -1640531527 : i32
    %7 = arith.muli %6, %c-1640531527_i32_0 : i32
    %c25387_i32 = arith.constant 25387 : i32
    %8 = arith.addi %7, %c25387_i32 : i32
    "tpu.prng_set_seed_32"(%8) : (i32) -> ()
    %c0_i32 = arith.constant 0 : i32
    %c0_i32_1 = arith.constant 0 : i32
    %cst = arith.constant -0.99999994 : f32
    %cst_2 = arith.constant 1.000000e+00 : f32
    %9 = vector.broadcast %cst : f32 to vector<1x1xf32>
    %10 = vector.broadcast %cst_2 : f32 to vector<1x1xf32>
    %11 = "tpu.prng_random_bits"() : () -> vector<8x1024xi32>
    %c9_i32 = arith.constant 9 : i32
    %12 = vector.broadcast %c9_i32 : i32 to vector<8x1024xi32>
    %13 = arith.shrui %11, %12 : vector<8x1024xi32>
    %c1065353216_i32 = arith.constant 1065353216 : i32
    %14 = vector.broadcast %c1065353216_i32 : i32 to vector<8x1024xi32>
    %15 = arith.ori %13, %14 : vector<8x1024xi32>
    %16 = tpu.bitcast %15 : vector<8x1024xi32> -> vector<8x1024xf32>
    %cst_3 = arith.constant 1.000000e+00 : f32
    %17 = vector.broadcast %cst_3 : f32 to vector<8x1024xf32>
    %18 = arith.subf %16, %17 : vector<8x1024xf32>
    %19 = arith.subf %10, %9 : vector<1x1xf32>
    %20 = vector.broadcast %19 : vector<1x1xf32> to vector<8x1024xf32>
    %21 = arith.mulf %18, %20 : vector<8x1024xf32>
    %22 = vector.broadcast %9 : vector<1x1xf32> to vector<8x1024xf32>
    %23 = arith.addf %21, %22 : vector<8x1024xf32>
    %24 = vector.broadcast %9 : vector<1x1xf32> to vector<8x1024xf32>
    %25 = arith.maximumf %24, %23 : vector<8x1024xf32>
    %cst_4 = arith.constant 0.000000e+00 : f32
    %26 = vector.broadcast %cst_4 : f32 to vector<8x1024xf32>
    %27 = arith.subf %26, %25 : vector<8x1024xf32>
    %28 = arith.mulf %25, %27 : vector<8x1024xf32>
    %29 = math.log1p %28 : vector<8x1024xf32>
    %cst_5 = arith.constant 0.000000e+00 : f32
    %30 = vector.broadcast %cst_5 : f32 to vector<8x1024xf32>
    %31 = arith.subf %30, %29 : vector<8x1024xf32>
    %cst_6 = arith.constant 5.000000e+00 : f32
    %32 = vector.broadcast %cst_6 : f32 to vector<8x1024xf32>
    %33 = arith.cmpf olt, %31, %32 : vector<8x1024xf32>
    %cst_7 = arith.constant 2.500000e+00 : f32
    %34 = vector.broadcast %cst_7 : f32 to vector<8x1024xf32>
    %35 = arith.subf %31, %34 : vector<8x1024xf32>
    %36 = math.sqrt %31 : vector<8x1024xf32>
    %cst_8 = arith.constant 3.000000e+00 : f32
    %37 = vector.broadcast %cst_8 : f32 to vector<8x1024xf32>
    %38 = arith.subf %36, %37 : vector<8x1024xf32>
    %39 = arith.select %33, %35, %38 : vector<8x1024xi1>, vector<8x1024xf32>
    %cst_9 = arith.constant 2.81022636E-8 : f32
    %cst_10 = arith.constant -2.00214257E-4 : f32
    %40 = vector.broadcast %cst_9 : f32 to vector<8x1024xf32>
    %41 = vector.broadcast %cst_10 : f32 to vector<8x1024xf32>
    %42 = arith.select %33, %40, %41 : vector<8x1024xi1>, vector<8x1024xf32>
    %cst_11 = arith.constant 3.43273939E-7 : f32
    %cst_12 = arith.constant 1.00950558E-4 : f32
    %43 = vector.broadcast %cst_11 : f32 to vector<8x1024xf32>
    %44 = vector.broadcast %cst_12 : f32 to vector<8x1024xf32>
    %45 = arith.select %33, %43, %44 : vector<8x1024xi1>, vector<8x1024xf32>
    %46 = arith.mulf %42, %39 : vector<8x1024xf32>
    %47 = arith.addf %45, %46 : vector<8x1024xf32>
    %cst_13 = arith.constant -3.5233877E-6 : f32
    %cst_14 = arith.constant 0.00134934322 : f32
    %48 = vector.broadcast %cst_13 : f32 to vector<8x1024xf32>
    %49 = vector.broadcast %cst_14 : f32 to vector<8x1024xf32>
    %50 = arith.select %33, %48, %49 : vector<8x1024xi1>, vector<8x1024xf32>
    %51 = arith.mulf %47, %39 : vector<8x1024xf32>
    %52 = arith.addf %50, %51 : vector<8x1024xf32>
    %cst_15 = arith.constant -4.39150654E-6 : f32
    %cst_16 = arith.constant -0.00367342844 : f32
    %53 = vector.broadcast %cst_15 : f32 to vector<8x1024xf32>
    %54 = vector.broadcast %cst_16 : f32 to vector<8x1024xf32>
    %55 = arith.select %33, %53, %54 : vector<8x1024xi1>, vector<8x1024xf32>
    %56 = arith.mulf %52, %39 : vector<8x1024xf32>
    %57 = arith.addf %55, %56 : vector<8x1024xf32>
    %cst_17 = arith.constant 2.1858087E-4 : f32
    %cst_18 = arith.constant 0.00573950773 : f32
    %58 = vector.broadcast %cst_17 : f32 to vector<8x1024xf32>
    %59 = vector.broadcast %cst_18 : f32 to vector<8x1024xf32>
    %60 = arith.select %33, %58, %59 : vector<8x1024xi1>, vector<8x1024xf32>
    %61 = arith.mulf %57, %39 : vector<8x1024xf32>
    %62 = arith.addf %60, %61 : vector<8x1024xf32>
    %cst_19 = arith.constant -0.00125372503 : f32
    %cst_20 = arith.constant -0.0076224613 : f32
    %63 = vector.broadcast %cst_19 : f32 to vector<8x1024xf32>
    %64 = vector.broadcast %cst_20 : f32 to vector<8x1024xf32>
    %65 = arith.select %33, %63, %64 : vector<8x1024xi1>, vector<8x1024xf32>
    %66 = arith.mulf %62, %39 : vector<8x1024xf32>
    %67 = arith.addf %65, %66 : vector<8x1024xf32>
    %cst_21 = arith.constant -0.00417768164 : f32
    %cst_22 = arith.constant 0.00943887047 : f32
    %68 = vector.broadcast %cst_21 : f32 to vector<8x1024xf32>
    %69 = vector.broadcast %cst_22 : f32 to vector<8x1024xf32>
    %70 = arith.select %33, %68, %69 : vector<8x1024xi1>, vector<8x1024xf32>
    %71 = arith.mulf %67, %39 : vector<8x1024xf32>
    %72 = arith.addf %70, %71 : vector<8x1024xf32>
    %cst_23 = arith.constant 0.246640727 : f32
    %cst_24 = arith.constant 1.00167406 : f32
    %73 = vector.broadcast %cst_23 : f32 to vector<8x1024xf32>
    %74 = vector.broadcast %cst_24 : f32 to vector<8x1024xf32>
    %75 = arith.select %33, %73, %74 : vector<8x1024xi1>, vector<8x1024xf32>
    %76 = arith.mulf %72, %39 : vector<8x1024xf32>
    %77 = arith.addf %75, %76 : vector<8x1024xf32>
    %cst_25 = arith.constant 1.50140941 : f32
    %cst_26 = arith.constant 2.83297682 : f32
    %78 = vector.broadcast %cst_25 : f32 to vector<8x1024xf32>
    %79 = vector.broadcast %cst_26 : f32 to vector<8x1024xf32>
    %80 = arith.select %33, %78, %79 : vector<8x1024xi1>, vector<8x1024xf32>
    %81 = arith.mulf %77, %39 : vector<8x1024xf32>
    %82 = arith.addf %80, %81 : vector<8x1024xf32>
    %83 = math.absf %25 : vector<8x1024xf32>
    %cst_27 = arith.constant 1.000000e+00 : f32
    %84 = vector.broadcast %cst_27 : f32 to vector<8x1024xf32>
    %85 = arith.cmpf oeq, %83, %84 : vector<8x1024xf32>
    %cst_28 = arith.constant 0x7F800000 : f32
    %86 = vector.broadcast %cst_28 : f32 to vector<8x1024xf32>
    %87 = arith.mulf %86, %25 : vector<8x1024xf32>
    %88 = arith.mulf %82, %25 : vector<8x1024xf32>
    %89 = arith.select %85, %87, %88 : vector<8x1024xi1>, vector<8x1024xf32>
    %cst_29 = arith.constant 1.41421354 : f32
    %90 = vector.broadcast %cst_29 : f32 to vector<8x1024xf32>
    %91 = arith.mulf %90, %89 : vector<8x1024xf32>
    %cst_30 = arith.constant 1.000000e+00 : f32
    %92 = vector.broadcast %cst_30 : f32 to vector<8x1024xf32>
    %93 = arith.mulf %92, %91 : vector<8x1024xf32>
    %c0_31 = arith.constant 0 : index
    %c0_32 = arith.constant 0 : index
    %c0_33 = arith.constant 0 : index
    %94 = vector.load %arg4[%c0_31, %c0_32, %c0_33] : memref<1x8x1024xf32, #tpu.memory_space<vmem>>, vector<1x8x1024xf32>
    %95 = vector.shape_cast %94 : vector<1x8x1024xf32> to vector<8x1024xf32>
    %c0_34 = arith.constant 0 : index
    %c0_35 = arith.constant 0 : index
    %c0_36 = arith.constant 0 : index
    %96 = vector.load %arg5[%c0_34, %c0_35, %c0_36] : memref<1x32x1xf32, #tpu.memory_space<vmem>>, vector<1x32x1xf32>
    %97 = vector.shape_cast %96 : vector<1x32x1xf32> to vector<32x1xf32>
    %c0_37 = arith.constant 0 : index
    %c0_38 = arith.constant 0 : index
    %98 = vector.load %arg6[%c0_37, %c0_38] : memref<32x8xbf16, #tpu.memory_space<vmem>>, vector<32x8xbf16>
    %c0_39 = arith.constant 0 : index
    %c0_40 = arith.constant 0 : index
    %99 = vector.load %arg7[%c0_39, %c0_40] : memref<8x32xbf16, #tpu.memory_space<vmem>>, vector<8x32xbf16>
    %c0_41 = arith.constant 0 : index
    %c0_42 = arith.constant 0 : index
    %100 = vector.load %arg8[%c0_41, %c0_42] : memref<8x1xf32, #tpu.memory_space<vmem>>, vector<8x1xf32>
    %cst_43 = arith.constant 0.99999988 : f32
    %101 = arith.mulf %cst_43, %1 : f32
    %cst_44 = arith.constant 1.000000e+00 : f32
    %102 = arith.subf %cst_44, %101 : f32
    %103 = vector.broadcast %102 : f32 to vector<8x1024xf32>
    %104 = arith.mulf %103, %93 : vector<8x1024xf32>
    %105 = vector.broadcast %1 : f32 to vector<8x1024xf32>
    %106 = arith.mulf %105, %95 : vector<8x1024xf32>
    %107 = arith.addf %104, %106 : vector<8x1024xf32>
    %cst_45 = arith.constant 0.99999988 : f32
    %108 = vector.broadcast %cst_45 : f32 to vector<8x1024xf32>
    %109 = arith.mulf %108, %93 : vector<8x1024xf32>
    %110 = arith.subf %95, %109 : vector<8x1024xf32>
    %c0_46 = arith.constant 0 : index
    %c0_47 = arith.constant 0 : index
    %c0_48 = arith.constant 0 : index
    %111 = vector.load %arg10[%c0_46, %c0_47, %c0_48] : memref<1x8x1024xf32, #tpu.memory_space<vmem>>, vector<1x8x1024xf32>
    %112 = vector.shape_cast %111 : vector<1x8x1024xf32> to vector<8x1024xf32>
    %113 = vector.shape_cast %110 : vector<8x1024xf32> to vector<1x8x1024xf32>
    tpu.vector_store %arg10[%c0_46, %c0_47, %c0_48], %113 {strides = array<i32>} : memref<1x8x1024xf32, #tpu.memory_space<vmem>>, vector<1x8x1024xf32>,
    %114 = arith.truncf %107 : vector<8x1024xf32> to vector<8x1024xbf16>
    %cst_49 = arith.constant dense<0.000000e+00> : vector<32x1024xf32>
    %115 = tpu.matmul %98, %114, %cst_49 {dimension_numbers = #tpu.dot_dimension_numbers<[1], [0], [0], [1], [0, 0, 1, 1], [], []>} : vector<32x8xbf16>, vector<8x1024xbf16>, vector<32x1024xf32> -> vector<32x1024xf32>
    %116 = arith.truncf %115 : vector<32x1024xf32> to vector<32x1024xbf16>
    %117 = arith.truncf %97 : vector<32x1xf32> to vector<32x1xbf16>
    %118 = vector.broadcast %117 : vector<32x1xbf16> to vector<32x1024xbf16>
    %119 = arith.addf %116, %118 : vector<32x1024xbf16>
    %120 = arith.mulf %119, %119 : vector<32x1024xbf16>
    %121 = arith.mulf %119, %120 : vector<32x1024xbf16>
    %cst_50 = arith.constant 4.467770e-02 : bf16
    %122 = vector.broadcast %cst_50 : bf16 to vector<32x1024xbf16>
    %123 = arith.mulf %122, %121 : vector<32x1024xbf16>
    %124 = arith.addf %119, %123 : vector<32x1024xbf16>
    %cst_51 = arith.constant 7.968750e-01 : bf16
    %125 = vector.broadcast %cst_51 : bf16 to vector<32x1024xbf16>
    %126 = arith.mulf %125, %124 : vector<32x1024xbf16>
    %127 = math.tanh %126 : vector<32x1024xbf16>
    %cst_52 = arith.constant 1.000000e+00 : bf16
    %128 = vector.broadcast %cst_52 : bf16 to vector<32x1024xbf16>
    %129 = arith.addf %128, %127 : vector<32x1024xbf16>
    %cst_53 = arith.constant 5.000000e-01 : bf16
    %130 = vector.broadcast %cst_53 : bf16 to vector<32x1024xbf16>
    %131 = arith.mulf %130, %129 : vector<32x1024xbf16>
    %132 = arith.mulf %119, %131 : vector<32x1024xbf16>
    %cst_54 = arith.constant dense<0.000000e+00> : vector<8x1024xf32>
    %133 = tpu.matmul %99, %132, %cst_54 {dimension_numbers = #tpu.dot_dimension_numbers<[1], [0], [0], [1], [0, 0, 1, 1], [], []>} : vector<8x32xbf16>, vector<32x1024xbf16>, vector<8x1024xf32> -> vector<8x1024xf32>
    %134 = vector.broadcast %100 : vector<8x1xf32> to vector<8x1024xf32>
    %135 = arith.addf %133, %134 : vector<8x1024xf32>
    %136 = arith.truncf %135 : vector<8x1024xf32> to vector<8x1024xbf16>
    %c0_55 = arith.constant 0 : index
    %c0_56 = arith.constant 0 : index
    %c0_57 = arith.constant 0 : index
    %137 = vector.load %arg9[%c0_55, %c0_56, %c0_57] : memref<1x8x1024xbf16, #tpu.memory_space<vmem>>, vector<1x8x1024xbf16>
    %138 = vector.shape_cast %137 : vector<1x8x1024xbf16> to vector<8x1024xbf16>
    %139 = vector.shape_cast %136 : vector<8x1024xbf16> to vector<1x8x1024xbf16>
    tpu.vector_store %arg9[%c0_55, %c0_56, %c0_57], %139 {strides = array<i32>} : memref<1x8x1024xbf16, #tpu.memory_space<vmem>>, vector<1x8x1024xbf16>,
    return
  }
  func.func @transform_0(%arg0: i32, %arg1: i32) -> i32 {
    %c0_i32 = arith.constant 0 : i32
    %c0_i32_0 = arith.constant 0 : i32
    return %c0_i32 : i32
  }
  func.func @transform_1(%arg0: i32, %arg1: i32) -> i32 {
    %c0_i32 = arith.constant 0 : i32
    %c0_i32_0 = arith.constant 0 : i32
    return %c0_i32 : i32
  }
  func.func @transform_2(%arg0: i32, %arg1: i32) -> (i32, i32, i32) {
    %c0_i32 = arith.constant 0 : i32
    %c0_i32_0 = arith.constant 0 : i32
    return %arg0, %c0_i32, %arg1 : i32, i32, i32
  }
  func.func @transform_3(%arg0: i32, %arg1: i32) -> (i32, i32, i32) {
    %c0_i32 = arith.constant 0 : i32
    %c0_i32_0 = arith.constant 0 : i32
    %c0_i32_1 = arith.constant 0 : i32
    return %arg0, %c0_i32, %c0_i32_0 : i32, i32, i32
  }
  func.func @transform_4(%arg0: i32, %arg1: i32) -> (i32, i32) {
    %c0_i32 = arith.constant 0 : i32
    %c0_i32_0 = arith.constant 0 : i32
    %c0_i32_1 = arith.constant 0 : i32
    return %c0_i32, %c0_i32_0 : i32, i32
  }
  func.func @transform_5(%arg0: i32, %arg1: i32) -> (i32, i32) {
    %c0_i32 = arith.constant 0 : i32
    %c0_i32_0 = arith.constant 0 : i32
    %c0_i32_1 = arith.constant 0 : i32
    return %c0_i32, %c0_i32_0 : i32, i32
  }
  func.func @transform_6(%arg0: i32, %arg1: i32) -> (i32, i32) {
    %c0_i32 = arith.constant 0 : i32
    %c0_i32_0 = arith.constant 0 : i32
    %c0_i32_1 = arith.constant 0 : i32
    return %c0_i32, %c0_i32_0 : i32, i32
  }
  func.func @transform_7(%arg0: i32, %arg1: i32) -> (i32, i32, i32) {
    %c0_i32 = arith.constant 0 : i32
    %c0_i32_0 = arith.constant 0 : i32
    return %arg0, %c0_i32, %arg1 : i32, i32, i32
  }
  func.func @transform_8(%arg0: i32, %arg1: i32) -> (i32, i32, i32) {
    %c0_i32 = arith.constant 0 : i32
    %c0_i32_0 = arith.constant 0 : i32
    return %arg0, %c0_i32, %arg1 : i32, i32, i32
  }
}

</mosaic_0001>

<bundles_post_ra>
// kernel: tpu_custom_call.1
= control target key start
LH: loop header
LB: loop body
LE: loop exit
PB: predicated region body
PF: predicated region fallthrough
CT: control target
= control target key end

     0   :  { %s3569_s0 = inlined_call_operand.<no memory space> [shape: s32[1], index: 0, kind: input, shape index: {}]   ;;  %s3570_s1 = inlined_call_operand.vmem [shape: f32[2], index: 1, kind: input, shape index: {}]   ;;  %s3571_s2 = inlined_call_operand.hbm [shape: f32[2,8,1024], index: 2, kind: input, shape index: {}]   ;;  %s3572_s3 = inlined_call_operand.vmem [shape: f32[2,32,1], index: 3, kind: input, shape index: {}]   ;;  %s3573_s4 = inlined_call_operand.vmem [shape: bf16[32,8], index: 4, kind: input, shape index: {}]   ;;  %s3574_s5 = inlined_call_operand.vmem [shape: bf16[8,32], index: 5, kind: input, shape index: {}]   ;;  %s3575_s6 = inlined_call_operand.vmem [shape: f32[8,1], index: 6, kind: input, shape index: {}]   ;;  %s3576_s7 = inlined_call_operand.hbm [shape: bf16[2,8,1024], index: 7, kind: output, shape index: {0}]   ;;  %s3577_s8 = inlined_call_operand.hbm [shape: f32[2,8,1024], index: 8, kind: output, shape index: {1}]  }
   0x1   :  { %3620 = sst [smem:[#allocation33_spill]] %s3570_s1 }
   0x2   :  { %14 = sst [smem:[#allocation2]] %s3569_s0 }
   0x3   :  { %15 = vsyncpa [#allocation6], 0 }
   0x4   :  { %16 = vsyncpa [#allocation4], 0 }
   0x5   :  { %18 = vsyncpa [#allocation4 + $0x1], 0 }
   0x6   :  { %19 = vsyncpa [#allocation5], 0 }
   0x7   :  { %21 = vsyncpa [#allocation5 + $0x1], 0 }
   0x8   :  { %22 = vsyncpa [#allocation10], 0 }
   0x9   :  { %24 = vsyncpa [#allocation10 + $0x1], 0  ;;  %s2391_s29 = smov 0   ;;  %s2393_s30 = smov 0  }
   0xa   :  { %s2395_s9 = smov 0   ;;  %s2397_s10 = smov 0  }
   0xb   :  { %s2399_s11 = smov 0   ;;  %s2401_s12 = smov 0  }
   0xc LB: > { %s1931_s0 = sadd.s32 4294967295, %s2327_s12   ;;  %s1932_s13 = sadd.s32 4294967294, %s2327_s12   ;;  %s2327_s12 = sphi %s2401_s12, %s30_s12   ;;  %s2323_s11 = sphi %s2399_s11, %s3711_s11   ;;  %s2319_s10 = sphi %s2397_s10, %s3710_s10   ;;  %s2315_s9 = sphi %s2395_s9, %s3709_s9   ;;  %s2311_s30 = sphi %s2393_s30, %s3708_s30   ;;  %s2307_s29 = sphi %s2391_s29, %s3707_s29  }
   0xd   : > { %p106_p0 = scmp.ne.s32.totalorder %s2311_s30, %s2307_s29  ;;  %p2425_p1 = scmp.eq.s32.totalorder %s1931_s0, 0 }
   0xe   : > { %p2429_p2 = scmp.eq.s32.totalorder %s1931_s0, 1  ;;  %p227_p3 = scmp.eq.s32.totalorder %s1932_s13, 1 }
   0xf   : > { %s3621_s14 = scalar_select %p2425_p1, 1, 0 }
  0x10   : > { %p2435_p4 = por %p2425_p1, %p106_p0  ;;  %p1933_p5 = scmp.ge.s32.totalorder %s2327_s12, 1 }
  0x11   : > { %p2440_p6 = por %p227_p3, %p106_p0  ;;  %p262_p7 = scmp.lt.s32.totalorder %s2327_s12, 3 }
  0x12   : > { %s3623_s16 = scalar_select %p2435_p4, 1, 0 }
  0x13   : > { %s3624_s17 = scalar_select %p2440_p6, 1, 0 }
  0x14   : > { %s3625_s1 = sld [smem:[#allocation33_spill]]  ;;  %p2448_p8 = pnand %p1933_p5, %p262_p7 }
  0x15   : > { %s42_s23 = sadd.s32 1, %s2323_s11  ;;  %s93_s24 = sadd.s32 1, %s2315_s9 }
  0x16   : > { %p2018_p10 = pneg %p2448_p8  ;;  %p44_p12 = scmp.ge.s32.totalorder %s42_s23, 2 }
  0x18   : > { %p2457_p11 = pnand %p2018_p10, %p2425_p1 }
  0x1a   : > { %s278_s20 = sshll.u32 %s3625_s1, 4  ;;  %p2166_p0 = pneg %p2457_p11  ;;  %s279_s20 = int_to_ptr.vmem [resolvable:$true] %s278_s20 }
  0x1b   : > { %s2164_s25 = scalar_lea.vmem %s279_s20, 16  ;;  %p2172_p7 = scmp.lt.s32.totalorder %s279_s20, %s279_s20 }
  0x1c   : > { %p2165_p13 = scmp.ne.s32.totalorder %s279_s20, %s2164_s25  ;;  %p2173_p6 = scmp.lt.s32.totalorder %s2164_s25, %s2164_s25 }
  0x1e   : > { %p2167_p3 = pnand %p2166_p0, %p2165_p13  ;;  %p2174_p9 = por %p2173_p6, %p2172_p7 }
  0x20   : > { %p2168_p5 = pneg %p2167_p3 }
  0x22   : > { %p2175_p4 = pnand %p2174_p9, %p2168_p5 }
  0x24   : > { %2178 = shalt.err (!%p2175_p4)
}
  0x25   : > { %s2329_s26 = smov [#allocation3]   ;;  %s3713_s23 = smov (%p44_p12, %s42_s23), 0 }
  0x26   : > { %2021 = dma.vmem_to_smem (!%p2457_p11), %s279_s20, 16, %s2329_s26, [#allocation6]  }
  0x27   : > { %p100_p10 = scmp.ne.s32.totalorder %s2315_s9, %s2311_s30  ;;  %p101_p6 = scmp.eq.s32.totalorder %s2327_s12, 0 }
  0x28   : > { %s88_s27 = ssub.s32 %s2323_s11, %s3713_s23  ;;  %p2034_p4 = scmp.lt.s32.totalorder %s2327_s12, 2 }
  0x29   : > { %p91_p9 = scmp.eq.s32.totalorder %s88_s27, 0  ;;  %p102_p13 = por %p101_p6, %p100_p10 }
  0x2a   : > { %p2477_p0 = por %p2429_p2, %p100_p10  ;;  %s298_s0 = sand.u32 1, %s2315_s9  }
  0x2b   : > { %s2483_s13 = scalar_select %p91_p9, %s2315_s9, %s93_s24  }
  0x2c   : > { %s3628_s28 = scalar_select %p2477_p0, 1, 0 }
  0x2d   : > { %s1936_s18 = sshll.u32 %s298_s0, 6  ;;  %s2000_s19 = sshll.u32 %s2323_s11, 10 }
  0x2e   : > { %s2489_s25 = scalar_lea.hbm %s3571_s2, %s2000_s19  ;;  %s302_s26 = scalar_lea.vmem [#allocation7], %s1936_s18 }
  0x2f   : > { %s312_s15 = sshll.u32 %s302_s26, 4  ;;  %p2493_p2 = pnand %p2034_p4, %p102_p13  ;;  %s2491_s15 = int_to_ptr.vmem [resolvable:$true] %s312_s15 }
  0x30   : > { %s299_s24 = scalar_lea.sflag [#allocation4], %s298_s0  ;;  %s2179_s1 = scalar_lea.hbm %s2489_s25, 1024 }
  0x31   : > { %p2180_p11 = scmp.ne.s32.totalorder %s2489_s25, %s2179_s1  ;;  %p2181_p12 = pneg %p2493_p2 }
  0x32   : > { %s2184_s20 = scalar_lea.hbm %s3571_s2, 2048  ;;  %p2185_p7 = scmp.lt.u32.totalorder %s2489_s25, %s3571_s2 }
  0x33   : > { %p2182_p3 = pnand %p2181_p12, %p2180_p11  ;;  %p2186_p10 = scmp.lt.u32.totalorder %s2184_s20, %s2179_s1 }
  0x34   : > { %p2188_p4 = scmp.lt.u32.totalorder %s2179_s1, %s2489_s25 }
  0x35   : > { %p2183_p5 = pneg %p2182_p3  ;;  %p2187_p6 = por %p2186_p10, %p2185_p7 }
  0x37   : > { %p2189_p9 = por %p2188_p4, %p2187_p6 }
  0x39   : > { %p2190_p13 = pnand %p2189_p9, %p2183_p5 }
  0x3b   : > { %2193 = shalt.err (!%p2190_p13)
}
  0x3c   : > { %s2194_s0 = scalar_lea.vmem %s2491_s15, 1024  ;;  %s2330_s19 = smov [#allocation7]  }
  0x3d   : > { %p2195_p11 = scmp.ne.s32.totalorder %s2491_s15, %s2194_s0  ;;  %s2199_s18 = sshll.u32 %s2330_s19, 4  ;;  %s2200_s18 = int_to_ptr.vmem [resolvable:$false] %s2199_s18 }
  0x3e   : > { %s2201_s22 = scalar_lea.vmem %s2200_s18, 2048  ;;  %p2202_p1 = scmp.lt.s32.totalorder %s2491_s15, %s2200_s18 }
  0x3f   : > { %p2197_p3 = pnand %p2195_p11, %p2181_p12  ;;  %p2203_p7 = scmp.lt.s32.totalorder %s2201_s22, %s2194_s0 }
  0x41   : > { %p2198_p0 = pneg %p2197_p3  ;;  %p2204_p10 = por %p2203_p7, %p2202_p1 }
  0x43   : > { %p2205_p6 = pnand %p2204_p10, %p2198_p0 }
  0x45   : > { %2208 = shalt.err (!%p2205_p6)
}
  0x46   : > { %2025 = dma.hbm_to_vmem [thread:$0]  (!%p2493_p2), %s2489_s25, 1024, %s2491_s15, %s299_s24  }
  0x47   : > { %329 = sbr.rel (%p2448_p8) target bundleno = 913 (0x391), region = 48 }
  0x4e   : > { %p3630_p12 = scmp.ne.s32.totalorder %s3621_s14, 0 }
  0x50   : > { %2290 = dma.done.wait (%p3630_p12), [#allocation6], 16  }
  0x51   : > { %2292 = vsyncadd (%p3630_p12), [#allocation6], 4294967280  ;;  %s2529_s1 = sand.u32 1, %s2311_s30   ;;  %p3631_p1 = scmp.ne.s32.totalorder %s3623_s16, 0 }
  0x52   : > { %s1941_s27 = sshll.u32 %s2529_s1, 6  ;;  %s336_s20 = scalar_lea.sflag [#allocation4], %s2529_s1 }
  0x53   : > { %s2535_s25 = scalar_lea.vmem [#allocation7], %s1941_s27 }
  0x54   : > { %2294 = dma.done.wait (%p3631_p1), %s336_s20, 1024  }
  0x55   : > { %2296 = vsyncadd (%p3631_p1), %s336_s20, 4294966272 }
  0x56   : > { %344 = sfence }
  0x57   : > { %s398_s14 = sld [smem:[#allocation2]]  ;;  %s399_s21 = smul.u32 2654435769, %s2319_s10  ;;  %v403_v0 = vlaneseq }
  0x58   : > { %s2564_s16 = sld [smem:[#allocation3 + %s2319_s10]]  ;;  %s3149_s18 = scalar_lea.vmem [#allocation9], %s1941_s27 }
  0x59   : > { %p384_p8 = scmp.lt.s32.totalorder %s2319_s10, 1  ;;  %s2007_s27 = sshll.u32 %s2319_s10, 10 }
  0x5a   : > { %p3704_p2 = scmp.ne.s32.totalorder %s3628_s28, 0 }
  0x5b   : > { %s3192_s20 = scalar_select %p384_p8, %s2319_s10, 1 }
  0x5d   : > { %s400_s15 = sxor.u32 %s399_s21, %s398_s14  ;;  %s2001_s14 = sshll.u32 %s3192_s20, 5 }
  0x5e   : > { %s401_s24 = smul.u32 2654435769, %s400_s15  ;;  %s1788_s20 = sshll.u32 %s3149_s18, 4  ;;  %s1789_s20 = int_to_ptr.vmem [resolvable:$true] %s1788_s20 }
  0x5f   : > { %s1039_s0 = smul.f32 0.9999999, %s2564_s16  ;;  %s3495_s15 = scalar_lea.hbm %s3577_s8, %s2007_s27 }
  0x60   : > { %s402_s26 = sadd.s32 25387, %s401_s24  ;;  %s1756_s24 = scalar_lea.sflag [#allocation10], %s2529_s1 }
  0x61   : > { %v2542_v1 = vstv %s402_s26  ;;  %s1040_s19 = ssub.f32 1.0, %s1039_s0  ;;  %s2209_s26 = scalar_lea.vmem %s1789_s20, 1024 }
  0x62   : > { %v407_v2 = vadd.s32 %v2542_v1, %v403_v0  ;;  %v405_v17 = vxor.u32 %v2542_v1, %v2542_v1  ;;  %p2210_p0 = scmp.ne.s32.totalorder %s1789_s20, %s2209_s26 }
  0x64   : > { %v408_v3 = vadd.s32 %v407_v2, %v407_v2  ;;  %v409_v4 = vshll.u32 %v407_v2, 13  ;;  %v410_v5 = vshrl.u32 %v407_v2, 19  ;;  %v2547_v22 = vxor.u32 466688986, %v405_v17  ;;  %p2211_p5 = pnand %p2210_p0, %p3704_p2 }
  0x66   : > { %v411_v6 = vor.u32 %v410_v5, %v409_v4  ;;  %p2212_p4 = pneg %p2211_p5 }
  0x68   : > { %v412_v7 = vxor.u32 %v411_v6, %v408_v3 }
  0x6a   : > { %v413_v8 = vadd.s32 %v412_v7, %v408_v3  ;;  %v414_v9 = vshll.u32 %v412_v7, 15  ;;  %v415_v10 = vshrl.u32 %v412_v7, 17 }
  0x6c   : > { %v416_v11 = vor.u32 %v415_v10, %v414_v9 }
  0x6e   : > { %v417_v12 = vxor.u32 %v416_v11, %v413_v8 }
  0x70   : > { %v418_v13 = vadd.s32 %v417_v12, %v413_v8  ;;  %v419_v14 = vshll.u32 %v417_v12, 26  ;;  %v420_v15 = vshrl.u32 %v417_v12, 6 }
  0x72   : > { %v421_v16 = vor.u32 %v420_v15, %v419_v14 }
  0x74   : > { %v422_v18 = vxor.u32 %v421_v16, %v418_v13 }
  0x76   : > { %v423_v19 = vadd.s32 %v422_v18, %v418_v13  ;;  %v424_v20 = vshll.u32 %v422_v18, 6  ;;  %v425_v21 = vshrl.u32 %v422_v18, 26 }
  0x78   : > { %v426_v23 = vor.u32 %v425_v21, %v424_v20  ;;  %v428_v25 = vadd.s32 %v423_v19, %v2542_v1 }
  0x7a   : > { %v427_v24 = vxor.u32 %v426_v23, %v423_v19 }
  0x7c   : > { %v429_v26 = vadd.s32 %v427_v24, %v2547_v22 }
  0x7e   : > { %v430_v27 = vadd.s32 1, %v429_v26 }
  0x80   : > { %v431_v28 = vadd.s32 %v430_v27, %v428_v25  ;;  %v432_v29 = vshll.u32 %v430_v27, 17  ;;  %v433_v30 = vshrl.u32 %v430_v27, 15 }
  0x82   : > { %v434_v31 = vor.u32 %v433_v30, %v432_v29 }
  0x84   : > { %v435_v32 = vxor.u32 %v434_v31, %v431_v28 }
  0x86   : > { %v436_v33 = vadd.s32 %v435_v32, %v431_v28  ;;  %v437_v34 = vshll.u32 %v435_v32, 29  ;;  %v438_v35 = vshrl.u32 %v435_v32, 3 }
  0x88   : > { %v439_v36 = vor.u32 %v438_v35, %v437_v34 }
  0x8a   : > { %v440_v37 = vxor.u32 %v439_v36, %v436_v33 }
  0x8c   : > { %v441_v38 = vadd.s32 %v440_v37, %v436_v33  ;;  %v442_v39 = vshll.u32 %v440_v37, 16  ;;  %v443_v40 = vshrl.u32 %v440_v37, 16 }
  0x8e   : > { %v444_v41 = vor.u32 %v443_v40, %v442_v39 }
  0x90   : > { %v445_v42 = vxor.u32 %v444_v41, %v441_v38 }
  0x92   : > { %v446_v43 = vadd.s32 %v445_v42, %v441_v38  ;;  %v447_v44 = vshll.u32 %v445_v42, 24  ;;  %v448_v45 = vshrl.u32 %v445_v42, 8 }
  0x94   : > { %v449_v46 = vor.u32 %v448_v45, %v447_v44  ;;  %v451_v48 = vadd.s32 %v446_v43, %v2547_v22 }
  0x96   : > { %v450_v47 = vxor.u32 %v449_v46, %v446_v43 }
  0x98   : > { %v452_v49 = vadd.s32 %v450_v47, %v2542_v1 }
  0x9a   : > { %v453_v50 = vadd.s32 2, %v452_v49 }
  0x9c   : > { %v454_v51 = vadd.s32 %v453_v50, %v451_v48  ;;  %v455_v52 = vshll.u32 %v453_v50, 13  ;;  %v456_v53 = vshrl.u32 %v453_v50, 19  ;;  %v3582_v50 = vmov 0  }
  0x9d   : > { %1173 = vmatprep.mubr.bf16.mxu0 %v3582_v50  ;;  %1226 = vmatprep.mubr.bf16.mxu1 %v3582_v50 }
  0x9e   : > { %v457_v54 = vor.u32 %v456_v53, %v455_v52  ;;  %2096 = vset.pattern.permute.xlu0 %v3582_v50  ;;  %2097 = vset.pattern.permute.xlu1 %v3582_v50 }
  0xa0   : > { %v458_v55 = vxor.u32 %v457_v54, %v454_v51 }
  0xa2   : > { %v459_v56 = vadd.s32 %v458_v55, %v454_v51  ;;  %v460_v57 = vshll.u32 %v458_v55, 15  ;;  %v461_v58 = vshrl.u32 %v458_v55, 17 }
  0xa4   : > { %v462_v59 = vor.u32 %v461_v58, %v460_v57 }
  0xa6   : > { %v463_v60 = vxor.u32 %v462_v59, %v459_v56 }
  0xa8   : > { %v464_v61 = vadd.s32 %v463_v60, %v459_v56  ;;  %v465_v62 = vshll.u32 %v463_v60, 26  ;;  %v466_v63 = vshrl.u32 %v463_v60, 6 }
  0xaa   : > { %v467_v0 = vor.u32 %v466_v63, %v465_v62 }
  0xac   : > { %v468_v2 = vxor.u32 %v467_v0, %v464_v61 }
  0xae   : > { %v469_v3 = vadd.s32 %v468_v2, %v464_v61  ;;  %v470_v4 = vshll.u32 %v468_v2, 6  ;;  %v471_v5 = vshrl.u32 %v468_v2, 26 }
  0xb0   : > { %v472_v6 = vor.u32 %v471_v5, %v470_v4  ;;  %v474_v8 = vadd.s32 %v469_v3, %v2542_v1 }
  0xb2   : > { %v473_v7 = vxor.u32 %v472_v6, %v469_v3 }
  0xb4   : > { %v475_v9 = vadd.s32 %v473_v7, %v2542_v1 }
  0xb6   : > { %v476_v10 = vadd.s32 3, %v475_v9 }
  0xb8   : > { %v477_v11 = vadd.s32 %v476_v10, %v474_v8  ;;  %v478_v12 = vshll.u32 %v476_v10, 17  ;;  %v479_v13 = vshrl.u32 %v476_v10, 15 }
  0xba   : > { %v480_v14 = vor.u32 %v479_v13, %v478_v12 }
  0xbc   : > { %v481_v15 = vxor.u32 %v480_v14, %v477_v11 }
  0xbe   : > { %v482_v16 = vadd.s32 %v481_v15, %v477_v11  ;;  %v483_v17 = vshll.u32 %v481_v15, 29  ;;  %v484_v18 = vshrl.u32 %v481_v15, 3 }
  0xc0   : > { %v485_v19 = vor.u32 %v484_v18, %v483_v17 }
  0xc2   : > { %v486_v20 = vxor.u32 %v485_v19, %v482_v16 }
  0xc4   : > { %v487_v21 = vadd.s32 %v486_v20, %v482_v16  ;;  %v488_v23 = vshll.u32 %v486_v20, 16  ;;  %v489_v24 = vshrl.u32 %v486_v20, 16 }
  0xc6   : > { %v490_v25 = vor.u32 %v489_v24, %v488_v23 }
  0xc8   : > { %v491_v26 = vxor.u32 %v490_v25, %v487_v21 }
  0xca   : > { %v492_v27 = vadd.s32 %v491_v26, %v487_v21  ;;  %v493_v28 = vshll.u32 %v491_v26, 24  ;;  %v494_v29 = vshrl.u32 %v491_v26, 8 }
  0xcc   : > { %v495_v30 = vor.u32 %v494_v29, %v493_v28  ;;  %v497_v32 = vadd.s32 %v492_v27, %v2542_v1 }
  0xce   : > { %v496_v31 = vxor.u32 %v495_v30, %v492_v27 }
  0xd0   : > { %v498_v33 = vadd.s32 %v496_v31, %v2547_v22 }
  0xd2   : > { %v499_v34 = vadd.s32 4, %v498_v33 }
  0xd4   : > { %v500_v35 = vadd.s32 %v499_v34, %v497_v32  ;;  %v501_v36 = vshll.u32 %v499_v34, 13  ;;  %v502_v37 = vshrl.u32 %v499_v34, 19 }
  0xd6   : > { %v503_v38 = vor.u32 %v502_v37, %v501_v36 }
  0xd8   : > { %v504_v39 = vxor.u32 %v503_v38, %v500_v35 }
  0xda   : > { %v505_v40 = vadd.s32 %v504_v39, %v500_v35  ;;  %v506_v41 = vshll.u32 %v504_v39, 15  ;;  %v507_v42 = vshrl.u32 %v504_v39, 17 }
  0xdc   : > { %v508_v43 = vor.u32 %v507_v42, %v506_v41 }
  0xde   : > { %v509_v44 = vxor.u32 %v508_v43, %v505_v40 }
  0xe0   : > { %v510_v45 = vadd.s32 %v509_v44, %v505_v40  ;;  %v511_v46 = vshll.u32 %v509_v44, 26  ;;  %v512_v47 = vshrl.u32 %v509_v44, 6 }
  0xe2   : > { %v513_v48 = vor.u32 %v512_v47, %v511_v46 }
  0xe4   : > { %v514_v49 = vxor.u32 %v513_v48, %v510_v45 }
  0xe6   : > { %v515_v51 = vadd.s32 %v514_v49, %v510_v45  ;;  %v516_v52 = vshll.u32 %v514_v49, 6  ;;  %v517_v53 = vshrl.u32 %v514_v49, 26 }
  0xe8   : > { %v518_v54 = vor.u32 %v517_v53, %v516_v52  ;;  %v520_v56 = vadd.s32 %v515_v51, %v2547_v22 }
  0xea   : > { %v519_v55 = vxor.u32 %v518_v54, %v515_v51 }
  0xec   : > { %v521_v57 = vadd.s32 %v519_v55, %v2542_v1 }
  0xee   : > { %v522_v58 = vadd.s32 5, %v521_v57 }
  0xf0   : > { %v523_v59 = vxor.u32 %v522_v58, %v520_v56 }
  0xf2   : > { %524 = set.rngseed %v523_v59 }
  0xf3   : > { %v525_v60 = vrng }
  0xf4   : > { %v533_v61 = vshrl.u32 %v525_v60, 9  ;;  %v526_v62 = vrng  ;;  %v2590_v60 = vld [vmem:[%s2535_s25 + $0x8] sm:$0xff] }
  0xf5   : > { %v534_v63 = vshrl.u32 %v526_v62, 9  ;;  %v527_v0 = vrng  ;;  %3634 = vst [vmem:[#allocation17_spill] sm:$0xff] %v2590_v60 }
  0xf6   : > { %v541_v2 = vor.u32 1065353216, %v533_v61  ;;  %v535_v3 = vshrl.u32 %v527_v0, 9  ;;  %v528_v4 = vrng  ;;  %v2593_v61 = vstv %s2564_s16  ;;  %s388_s16 = scalar_lea.vmem %s3572_s3, %s2001_s14 }
  0xf7   : > { %v542_v5 = vor.u32 1065353216, %v534_v63  ;;  %v536_v6 = vshrl.u32 %v528_v4, 9  ;;  %v529_v7 = vrng  ;;  %3635 = vst [vmem:[#allocation18_spill] sm:$0xff] %v2593_v61 }
  0xf8   : > { %v1946_v8 = vadd.f32 -1.0, %v541_v2  ;;  %v543_v9 = vor.u32 1065353216, %v535_v3  ;;  %v537_v10 = vshrl.u32 %v529_v7, 9  ;;  %v530_v22 = vrng  ;;  %v2597_v2 = vld [vmem:[%s2535_s25] sm:$0xff]  ;;  %v2603_v7 = vmul.f32 %v2593_v61, %v2590_v60 }
  0xf9   : > { %v1947_v11 = vadd.f32 -1.0, %v542_v5  ;;  %v544_v1 = vor.u32 1065353216, %v536_v6  ;;  %v538_v12 = vshrl.u32 %v530_v22, 9  ;;  %v531_v13 = vrng  ;;  %3636 = vst [vmem:[#allocation19_spill] sm:$0xff] %v2597_v2 }
  0xfa   : > { %v565_v14 = vmul.f32 2.0, %v1946_v8  ;;  %v1948_v15 = vadd.f32 -1.0, %v543_v9  ;;  %v545_v16 = vor.u32 1065353216, %v537_v10  ;;  %v539_v17 = vshrl.u32 %v531_v13, 9  ;;  %v532_v18 = vrng  ;;  %3637 = vst [vmem:[#allocation20_spill] sm:$0xff] %v2603_v7  ;;  %v2606_v8 = vld [vmem:[%s2535_s25 + $0x18] sm:$0xff] }
  0xfb   : > { %v566_v19 = vmul.f32 2.0, %v1947_v11  ;;  %v1949_v20 = vadd.f32 -1.0, %v544_v1  ;;  %v546_v21 = vor.u32 1065353216, %v538_v12  ;;  %v540_v23 = vshrl.u32 %v532_v18, 9  ;;  %3638 = vst [vmem:[#allocation21_spill] sm:$0xff] %v2606_v8 }
  0xfc   : > { %v573_v24 = vadd.f32 -0.99999994, %v565_v14  ;;  %v567_v25 = vmul.f32 2.0, %v1948_v15  ;;  %v1950_v26 = vadd.f32 -1.0, %v545_v16  ;;  %v547_v27 = vor.u32 1065353216, %v539_v17  ;;  %v2623_v15 = vld [vmem:[%s2535_s25 + $0x28] sm:$0xff] }
  0xfd   : > { %v574_v28 = vadd.f32 -0.99999994, %v566_v19  ;;  %v568_v29 = vmul.f32 2.0, %v1949_v20  ;;  %v1951_v30 = vadd.f32 -1.0, %v546_v21  ;;  %v548_v31 = vor.u32 1065353216, %v540_v23  ;;  %3642 = vst [vmem:[#allocation25_spill] sm:$0xff] %v2623_v15 }
  0xfe   : > { %v2566_v32 = vmax.f32 %v573_v24, -0.99999994  ;;  %v575_v33 = vadd.f32 -0.99999994, %v567_v25  ;;  %v569_v34 = vmul.f32 2.0, %v1950_v26  ;;  %v1952_v40 = vadd.f32 -1.0, %v547_v27 }
  0xff   : > { %v2568_v35 = vmax.f32 %v574_v28, -0.99999994  ;;  %v576_v36 = vadd.f32 -0.99999994, %v568_v29  ;;  %v570_v37 = vmul.f32 2.0, %v1951_v30  ;;  %v1953_v41 = vadd.f32 -1.0, %v548_v31 }
 0x100   : > { %v589_v38 = vsub.f32 0.0, %v2566_v32  ;;  %v2571_v39 = vmax.f32 %v575_v33, -0.99999994  ;;  %v577_v46 = vadd.f32 -0.99999994, %v569_v34  ;;  %v571_v53 = vmul.f32 2.0, %v1952_v40 }
 0x101   : > { %v590_v42 = vsub.f32 0.0, %v2568_v35  ;;  %v2574_v43 = vmax.f32 %v576_v36, -0.99999994  ;;  %v578_v47 = vadd.f32 -0.99999994, %v570_v37  ;;  %v572_v54 = vmul.f32 2.0, %v1953_v41 }
 0x102   : > { %3632 = vst [vmem:[#allocation15_spill] sm:$0xff] %v2571_v39  ;;  %v597_v44 = vmul.f32 %v589_v38, %v2566_v32  ;;  %v591_v45 = vsub.f32 0.0, %v2571_v39  ;;  %v2585_v58 = vmax.f32 %v577_v46, -0.99999994  ;;  %v579_v63 = vadd.f32 -0.99999994, %v571_v53 }
 0x103   : > { %v598_v48 = vmul.f32 %v590_v42, %v2568_v35  ;;  %v592_v49 = vsub.f32 0.0, %v2574_v43  ;;  %v2587_v59 = vmax.f32 %v578_v47, -0.99999994  ;;  %v580_v0 = vadd.f32 -0.99999994, %v572_v54 }
 0x104   : > { %v605_v51 = vadd.f32 1.0, %v597_v44  ;;  %v599_v52 = vmul.f32 %v591_v45, %v2571_v39  ;;  %3633 = vst [vmem:[#allocation16_spill] sm:$0xff] %v2585_v58  ;;  %v608_v3 = vmul.f32 -0.5, %v597_v44  ;;  %v593_v5 = vsub.f32 0.0, %v2585_v58 }
 0x105   : > { %v614_v55 = vadd.f32 1.0, %v598_v48  ;;  %v2582_v56 = vmul.f32 %v592_v49, %v2574_v43  ;;  %v617_v4 = vmul.f32 -0.5, %v598_v48  ;;  %v594_v6 = vsub.f32 0.0, %v2587_v59 }
 0x106   : > { %2100 = vlog2.f32 %v605_v51  ;;  %v623_v57 = vadd.f32 1.0, %v599_v52  ;;  %v611_v9 = vand.u32 2147483647, %v597_v44  ;;  %v620_v10 = vand.u32 2147483647, %v598_v48 }
 0x107   : > { %2102 = vlog2.f32 %v614_v55  ;;  %v632_v62 = vadd.f32 1.0, %v2582_v56  ;;  %v626_v22 = vmul.f32 -0.5, %v599_v52  ;;  %v2610_v11 = vmul.f32 %v2593_v61, %v2597_v2 }
 0x108   : > { %2104 = vlog2.f32 %v623_v57  ;;  %v2613_v1 = vmul.f32 %v593_v5, %v2585_v58  ;;  %v2616_v12 = vmul.f32 %v594_v6, %v2587_v59  ;;  %v2618_v13 = vmax.f32 %v579_v63, -0.99999994 }
 0x109   : > { %2106 = vlog2.f32 %v632_v62  ;;  %3639 = vst [vmem:[#allocation22_spill] sm:$0xff] %v2610_v11  ;;  %v2620_v14 = vmax.f32 %v580_v0, -0.99999994  ;;  %v609_v16 = vadd.f32 1.0, %v608_v3  ;;  %v618_v17 = vadd.f32 1.0, %v617_v4 }
 0x10a   : > { %3640 = vst [vmem:[#allocation23_spill] sm:$0xff] %v2618_v13  ;;  %v2625_v18 = vstv %s1040_s19  ;;  %v2629_v19 = vmul.f32 %v2593_v61, %v2606_v8  ;;  %v629_v20 = vand.u32 2147483647, %v599_v52  ;;  %v635_v21 = vmul.f32 -0.5, %v2582_v56 }
 0x10b   : > { %3641 = vst [vmem:[#allocation24_spill] sm:$0xff] %v2620_v14  ;;  %3643 = vst [vmem:[#allocation26_spill] sm:$0xff] %v2625_v18  ;;  %v641_v23 = vadd.f32 1.0, %v2613_v1  ;;  %v650_v24 = vadd.f32 1.0, %v2616_v12  ;;  %v627_v25 = vadd.f32 1.0, %v626_v22  ;;  %v595_v26 = vsub.f32 0.0, %v2618_v13 }
 0x10c   : > { %3644 = vst [vmem:[#allocation27_spill] sm:$0xff] %v2629_v19  ;;  %v596_v27 = vsub.f32 0.0, %v2620_v14  ;;  %v2638_v28 = vmul.f32 %v2593_v61, %v2623_v15  ;;  %vm2640_vm0 = vcmp.lt.f32.partialorder %v611_v9, 0.0004427343  ;;  %vm2644_vm1 = vcmp.lt.f32.partialorder %v620_v10, 0.0004427343 }
 0x10d   : > { %v638_v33 = vand.u32 2147483647, %v2582_v56  ;;  %2108 = vlog2.f32 %v641_v23  ;;  %v610_v37 = vmul.f32 %v609_v16, %v597_v44  ;;  %v619_v38 = vmul.f32 %v618_v17, %v598_v48 }
 0x10e   : > { %3645 = vst [vmem:[#allocation28_spill] sm:$0xff] %v2638_v28  ;;  %2110 = vlog2.f32 %v650_v24  ;;  %vm2649_vm2 = vcmp.lt.f32.partialorder %v629_v20, 0.0004427343  ;;  %v636_v42 = vadd.f32 1.0, %v635_v21  ;;  %v2654_v45 = vmul.f32 %v596_v27, %v2620_v14 }
 0x10f   : > { %v628_v47 = vmul.f32 %v627_v25, %v599_v52  ;;  %v644_v49 = vmul.f32 -0.5, %v2613_v1  ;;  %v653_v51 = vmul.f32 -0.5, %v2616_v12  ;;  %v2659_v53 = vmul.f32 %v595_v26, %v2618_v13 }
 0x110   : > { %v2101_v29 = vpop.eup %2100  ;;  %vm2663_vm3 = vcmp.lt.f32.partialorder %v638_v33, 0.0004427343  ;;  %v2668_v55 = vmul.f32 inf, %v2587_v59  ;;  %v647_v63 = vand.u32 2147483647, %v2613_v1  ;;  %v637_v5 = vmul.f32 %v636_v42, %v2582_v56 }
 0x111   : > { %v2103_v34 = vpop.eup %2102  ;;  %v607_v36 = vmul.f32 0.6931472, %v2101_v29  ;;  %v662_v0 = vmul.f32 -0.5, %v2659_v53  ;;  %v668_v6 = vadd.f32 1.0, %v2654_v45  ;;  %v645_v9 = vadd.f32 1.0, %v644_v49 }
 0x112   : > { %v616_v40 = vmul.f32 0.6931472, %v2103_v34  ;;  %v2105_v46 = vpop.eup %2104  ;;  %3654 = vst [vmem:[#allocation29_spill] sm:$0xff] %v2668_v55  ;;  %v654_v10 = vadd.f32 1.0, %v653_v51  ;;  %v656_v22 = vand.u32 2147483647, %v2616_v12 }
 0x113   : > { %v2107_v44 = vpop.eup %2106  ;;  %v613_v57 = vsel %vm2640_vm0, %v610_v37, %v607_v36  ;;  %v625_v3 = vmul.f32 0.6931472, %v2105_v46  ;;  %v659_v16 = vadd.f32 1.0, %v2659_v53  ;;  %2112 = vlog2.f32 %v668_v6 }
 0x114   : > { %v622_v48 = vsel %vm2644_vm1, %v619_v38, %v616_v40  ;;  %v634_v4 = vmul.f32 0.6931472, %v2107_v44  ;;  %v2681_v17 = vsub.f32 0.0, %v613_v57  ;;  %v2684_v20 = vmul.f32 inf, %v2568_v35 }
 0x115   : > { %v2673_v62 = vsub.f32 0.0, %v622_v48  ;;  %vm2687_vm4 = vcmp.lt.f32.partialorder %v647_v63, 0.0004427343  ;;  %v663_v56 = vadd.f32 1.0, %v662_v0  ;;  %v631_v26 = vsel %vm2649_vm2, %v628_v47, %v625_v3 }
 0x116   : > { %v640_v27 = vsel %vm2663_vm3, %v637_v5, %v634_v4  ;;  %v671_v29 = vmul.f32 -0.5, %v2654_v45  ;;  %v674_v30 = vand.u32 2147483647, %v2654_v45  ;;  %v646_v33 = vmul.f32 %v645_v9, %v2613_v1 }
 0x117   : > { %2114 = vrsqrt.f32 %v2673_v62  ;;  %v2109_v25 = vpop.eup %2108  ;;  %v655_v34 = vmul.f32 %v654_v10, %v2616_v12  ;;  %vm657_vm5 = vcmp.lt.f32.partialorder %v656_v22, 0.0004427343  ;;  %v665_v38 = vand.u32 2147483647, %v2659_v53 }
 0x118   : > { %v2111_v31 = vpop.eup %2110  ;;  %2116 = vlog2.f32 %v659_v16  ;;  %v643_v36 = vmul.f32 0.6931472, %v2109_v25  ;;  %v2703_v40 = vsub.f32 0.0, %v631_v26  ;;  %v2705_v41 = vsub.f32 0.0, %v640_v27 }
 0x119   : > { %v652_v37 = vmul.f32 0.6931472, %v2111_v31  ;;  %2118 = vrsqrt.f32 %v2681_v17  ;;  %v2708_v42 = vmul.f32 %v663_v56, %v2659_v53  ;;  %vm686_vm6 = vcmp.lt.f32.partialorder %v2673_v62, 5.0 }
 0x11a   : > { %v672_v46 = vadd.f32 1.0, %v671_v29  ;;  %vm2711_vm7 = vcmp.lt.f32.partialorder %v674_v30, 0.0004427343  ;;  %v2716_v47 = vadd.f32 -2.5, %v2673_v62  ;;  %vm710_vm8 = vcmp.eq.f32.partialorder %v2673_v62, inf }
 0x11b   : > { %3657 = vst [vmem:[#allocation30_spill] sm:$0xff] %v2708_v42  ;;  %v658_v1 = vsel %vm657_vm5, %v655_v34, %v652_v37  ;;  %vm712_vm9 = vcmp.eq.f32.partialorder %v2673_v62, 0.0  ;;  %v713_v51 = vand.u32 2147483648, %v2673_v62  ;;  %v649_v53 = vsel %vm2687_vm4, %v646_v33, %v643_v36 }
 0x11c   : > { %v2718_v49 = vsub.f32 0.0, %v658_v1  ;;  %v3586_v44 = vmov -0.00020021426   ;;  %v3588_v54 = vmov 0.00010095056   ;;  %vm685_vm10 = vcmp.lt.f32.partialorder %v2681_v17, 5.0 }
 0x11d   : > { %v2728_v48 = vsel %vm686_vm6, 2.8102264e-08, %v3586_v44  ;;  %v2733_v57 = vsel %vm686_vm6, 3.4327394e-07, %v3588_v54  ;;  %v3592_v63 = vmov 0.0013493432   ;;  %v2113_v9 = vpop.eup %2112  ;;  %v673_v10 = vmul.f32 %v672_v46, %v2654_v45 }
 0x11e   : > { %v2738_v0 = vsel %vm686_vm6, -3.5233877e-06, %v3592_v63  ;;  %2120 = vrsqrt.f32 %v2718_v49  ;;  %v3609_v3 = vmov -0.0036734284   ;;  %v3596_v5 = vmov 0.0057395077  }
 0x11f   : > { %v2744_v4 = vsel %vm686_vm6, -4.3915065e-06, %v3609_v3  ;;  %v2749_v6 = vsel %vm686_vm6, 0.00021858087, %v3596_v5  ;;  %v3594_v22 = vmov -0.0076224613   ;;  %2122 = vrsqrt.f32 %v2705_v41 }
 0x120   : > { %v2756_v16 = vsel %vm686_vm6, -0.001253725, %v3594_v22  ;;  %v3598_v23 = vmov 0.0094388705   ;;  %v3590_v25 = vmov 1.001674  }
 0x121   : > { %v2761_v56 = vsel %vm686_vm6, -0.0041776816, %v3598_v23  ;;  %v2766_v26 = vsel %vm686_vm6, 0.24664073, %v3590_v25  ;;  %v2115_v27 = vpop.eup %2114  ;;  %v2768_v45 = vsub.f32 0.0, %v649_v53  ;;  %vm690_vm11 = vcmp.lt.f32.partialorder %v2718_v49, 5.0 }
 0x122   : > { %vm2771_vm12 = vcmp.lt.f32.partialorder %v665_v38, 0.0004427343  ;;  %v3660_v29 = vmov 0  ;;  %v3584_v30 = vmov 2.8329768   ;;  %v1954_v33 = vadd.f32 -2.5, %v2681_v17  ;;  %v2117_v37 = vpop.eup %2116 }
 0x123   : > { %v3661_v29 = vsel %vm2771_vm12, 4294967295, %v3660_v29  ;;  %v2778_v31 = vsel %vm686_vm6, 1.5014094, %v3584_v30  ;;  %v709_v34 = vmul.f32 %v2115_v27, %v2673_v62  ;;  %vm703_vm13 = vcmp.eq.f32.partialorder %v2681_v17, inf  ;;  %v2119_v27 = vpop.eup %2118 }
 0x124   : > { %3662 = vst [vmem:[#allocation31_spill] sm:$0xff] %v3661_v29  ;;  %v773_v36 = vsel %vm685_vm10, 2.8102264e-08, %v3586_v44  ;;  %v1959_v38 = vadd.f32 -2.5, %v2718_v49  ;;  %v670_v1 = vmul.f32 0.6931472, %v2113_v9 }
 0x125   : > { %vm705_vm14 = vcmp.eq.f32.partialorder %v2681_v17, 0.0  ;;  %v706_v46 = vand.u32 2147483648, %v2681_v17  ;;  %v781_v53 = vsel %vm685_vm10, 3.4327394e-07, %v3588_v54  ;;  %vm738_vm15 = vcmp.eq.f32.partialorder %v2718_v49, inf }
 0x126   : > { %v778_v50 = vsel %vm690_vm11, 2.8102264e-08, %v3586_v44  ;;  %v786_v24 = vsel %vm690_vm11, 3.4327394e-07, %v3588_v54  ;;  %v711_v9 = vsel %vm710_vm8, %v2673_v62, %v709_v34  ;;  %v2806_v21 = vsel %vm690_vm11, -3.5233877e-06, %v3592_v63 }
 0x127   : > { %v676_v52 = vsel %vm2711_vm7, %v673_v10, %v670_v1  ;;  %v714_v30 = vsel %vm712_vm9, %v713_v51, %v711_v9  ;;  %v702_v44 = vmul.f32 %v2119_v27, %v2681_v17  ;;  %vm740_vm0 = vcmp.eq.f32.partialorder %v2718_v49, 0.0 }
 0x128   : > { %v2817_v54 = vsel %vm690_vm11, -4.3915065e-06, %v3609_v3  ;;  %v2819_v34 = vmul.f32 0.6931472, %v2117_v37  ;;  %v2821_v25 = vsub.f32 0.0, %v676_v52  ;;  %v741_v63 = vand.u32 2147483648, %v2718_v49 }
 0x129   : > { %v2827_v12 = vsel %vm690_vm11, 0.00021858087, %v3596_v5  ;;  %v2832_v51 = vsel %vm690_vm11, -0.001253725, %v3594_v22  ;;  %v1963_v10 = vadd.f32 -3.0, %v714_v30  ;;  %v2121_v22 = vpop.eup %2120  ;;  %v704_v30 = vsel %vm703_vm13, %v2681_v17, %v702_v44 }
 0x12a   : > { %3663 = vst [vmem:[#allocation32_spill] sm:$0xff] %v2819_v34  ;;  %v2837_v37 = vsel %vm690_vm11, -0.0041776816, %v3598_v23  ;;  %v3664_v52 = vmov 1.001674   ;;  %2124 = vrsqrt.f32 %v2821_v25  ;;  %v737_v58 = vmul.f32 %v2121_v22, %v2718_v49  ;;  %v2123_v42 = vpop.eup %2122 }
 0x12b   : > { %v2842_v1 = vsel %vm690_vm11, 0.24664073, %v3664_v52  ;;  %v3665_v27 = vmov 2.8329768   ;;  %v3666_v5 = vmov 0.0013493432   ;;  %2126 = vrsqrt.f32 %v2703_v40 }
 0x12c   : > { %v2847_v9 = vsel %vm690_vm11, 1.5014094, %v3665_v27  ;;  %v805_v23 = vsel %vm685_vm10, -3.5233877e-06, %v3666_v5  ;;  %v2859_v13 = vsel %vm685_vm10, -4.3915065e-06, %v3609_v3  ;;  %v2880_v3 = vsel %vm686_vm6, %v2716_v47, %v1963_v10 }
 0x12d   : > { %v3667_v39 = vmov 0.0057395077   ;;  %v3668_v8 = vmov -0.0076224613   ;;  %v3669_v22 = vmov 0.0094388705   ;;  %v739_v62 = vsel %vm738_vm15, %v2718_v49, %v737_v58 }
 0x12e   : > { %v2870_v44 = vsel %vm685_vm10, 0.00021858087, %v3667_v39  ;;  %v2875_v19 = vsel %vm685_vm10, -0.001253725, %v3668_v8  ;;  %v2885_v29 = vsel %vm685_vm10, -0.0041776816, %v3669_v22  ;;  %v790_v47 = vmul.f32 %v2728_v48, %v2880_v3 }
 0x12f   : > { %v2890_v61 = vsel %vm685_vm10, 0.24664073, %v3664_v52  ;;  %v2895_v34 = vsel %vm685_vm10, 1.5014094, %v3665_v27  ;;  %vm692_vm1 = vcmp.lt.f32.partialorder %v2821_v25, 5.0  ;;  %v707_v10 = vsel %vm705_vm14, %v706_v46, %v704_v30 }
 0x130   : > { %v742_v14 = vsel %vm740_vm0, %v741_v63, %v739_v62  ;;  %v1961_v15 = vadd.f32 -2.5, %v2821_v25  ;;  %vm752_vm2 = vcmp.eq.f32.partialorder %v2821_v25, inf  ;;  %v1962_v28 = vadd.f32 -3.0, %v707_v10 }
 0x131   : > { %v1967_v2 = vadd.f32 -3.0, %v742_v14  ;;  %vm754_vm3 = vcmp.eq.f32.partialorder %v2821_v25, 0.0  ;;  %v755_v58 = vand.u32 2147483648, %v2821_v25  ;;  %v798_v11 = vadd.f32 %v790_v47, %v2733_v57 }
 0x132   : > { %v3670_v55 = vmov -0.00020021426   ;;  %v2917_v46 = vsel %vm685_vm10, %v1954_v33, %v1962_v28  ;;  %v723_v63 = vmul.f32 %v2123_v42, %v2705_v41  ;;  %vm724_vm4 = vcmp.eq.f32.partialorder %v2705_v41, inf }
 0x133   : > { %v780_v48 = vsel %vm692_vm1, 2.8102264e-08, %v3670_v55  ;;  %v2923_v14 = vsel %vm690_vm11, %v1959_v38, %v1967_v2  ;;  %v814_v30 = vmul.f32 %v798_v11, %v2880_v3  ;;  %v789_v57 = vmul.f32 %v773_v36, %v2917_v46 }
 0x134   : > { %v727_v62 = vand.u32 2147483648, %v2705_v41  ;;  %v794_v47 = vmul.f32 %v778_v50, %v2923_v14  ;;  %v3671_v10 = vmov 0.00010095056   ;;  %v725_v17 = vsel %vm724_vm4, %v2705_v41, %v723_v63  ;;  %v2125_v42 = vpop.eup %2124 }
 0x135   : > { %v788_v28 = vsel %vm692_vm1, 3.4327394e-07, %v3671_v10  ;;  %vm726_vm5 = vcmp.eq.f32.partialorder %v2705_v41, 0.0  ;;  %v822_v2 = vadd.f32 %v814_v30, %v2738_v0  ;;  %v797_v49 = vadd.f32 %v789_v57, %v781_v53  ;;  %v2127_v33 = vpop.eup %2126 }
 0x136   : > { %vm688_vm6 = vcmp.lt.f32.partialorder %v2705_v41, 5.0  ;;  %v728_v11 = vsel %vm726_vm5, %v727_v62, %v725_v17  ;;  %v802_v36 = vadd.f32 %v794_v47, %v786_v24  ;;  %v751_v38 = vmul.f32 %v2125_v42, %v2821_v25 }
 0x137   : > { %v1957_v50 = vadd.f32 -2.5, %v2705_v41  ;;  %v1965_v60 = vadd.f32 -3.0, %v728_v11  ;;  %v812_v63 = vsel %vm692_vm1, -3.5233877e-06, %v3666_v5  ;;  %v3672_v7 = vmov -0.0036734284  }
 0x138   : > { %v2944_v18 = vsel %vm692_vm1, -4.3915065e-06, %v3672_v7  ;;  %v838_v0 = vmul.f32 %v822_v2, %v2880_v3  ;;  %v813_v53 = vmul.f32 %v797_v49, %v2917_v46  ;;  %v818_v24 = vmul.f32 %v802_v36, %v2923_v14 }
 0x139   : > { %v753_v30 = vsel %vm752_vm2, %v2821_v25, %v751_v38  ;;  %v2954_v57 = vsel %vm688_vm6, %v1957_v50, %v1965_v60  ;;  %v776_v62 = vsel %vm688_vm6, 2.8102264e-08, %v3670_v55  ;;  %v2967_v60 = vsel %vm692_vm1, 0.00021858087, %v3667_v39 }
 0x13a   : > { %v756_v47 = vsel %vm754_vm3, %v755_v58, %v753_v30  ;;  %v846_v17 = vadd.f32 %v838_v0, %v2744_v4  ;;  %v821_v42 = vadd.f32 %v813_v53, %v805_v23  ;;  %v792_v2 = vmul.f32 %v776_v62, %v2954_v57 }
 0x13b   : > { %v826_v49 = vadd.f32 %v818_v24, %v2806_v21  ;;  %v1969_v11 = vadd.f32 -3.0, %v756_v47  ;;  %v784_v36 = vsel %vm688_vm6, 3.4327394e-07, %v3671_v10  ;;  %v2975_v58 = vsel %vm692_vm1, -0.001253725, %v3668_v8 }
 0x13c   : > { %v862_v4 = vmul.f32 %v846_v17, %v2880_v3  ;;  %v837_v23 = vmul.f32 %v821_v42, %v2917_v46  ;;  %v800_v21 = vadd.f32 %v792_v2, %v784_v36  ;;  %v2987_v0 = vsel %vm692_vm1, -0.0041776816, %v3669_v22 }
 0x13d   : > { %v842_v38 = vmul.f32 %v826_v49, %v2923_v14  ;;  %v2982_v50 = vsel %vm692_vm1, %v1961_v15, %v1969_v11  ;;  %v2992_v53 = vsel %vm692_vm1, 0.24664073, %v3664_v52  ;;  %v3002_v17 = vsel %vm692_vm1, 1.5014094, %v3665_v27 }
 0x13e   : > { %v796_v24 = vmul.f32 %v780_v48, %v2982_v50  ;;  %v870_v30 = vadd.f32 %v862_v4, %v2749_v6  ;;  %v845_v62 = vadd.f32 %v837_v23, %v2859_v13  ;;  %v816_v47 = vmul.f32 %v800_v21, %v2954_v57 }
 0x13f   : > { %v850_v15 = vadd.f32 %v842_v38, %v2817_v54  ;;  %v808_v42 = vsel %vm688_vm6, -3.5233877e-06, %v3666_v5  ;;  %v716_v2 = vmul.f32 %v2127_v33, %v2703_v40  ;;  %v3012_v54 = vmul.f32 inf, %v2566_v32 }
 0x140   : > { %v804_v48 = vadd.f32 %v796_v24, %v788_v28  ;;  %v886_v6 = vmul.f32 %v870_v30, %v2880_v3  ;;  %v861_v13 = vmul.f32 %v845_v62, %v2917_v46  ;;  %v824_v49 = vadd.f32 %v816_v47, %v808_v42 }
 0x141   : > { %v866_v11 = vmul.f32 %v850_v15, %v2923_v14  ;;  %v832_v25 = vsel %vm688_vm6, -4.3915065e-06, %v3672_v7  ;;  %vm717_vm7 = vcmp.eq.f32.partialorder %v2703_v40, inf  ;;  %vm719_vm8 = vcmp.eq.f32.partialorder %v2703_v40, 0.0 }
 0x142   : > { %v820_v36 = vmul.f32 %v804_v48, %v2982_v50  ;;  %v894_v28 = vadd.f32 %v886_v6, %v2756_v16  ;;  %v869_v33 = vadd.f32 %v861_v13, %v2870_v44  ;;  %v840_v4 = vmul.f32 %v824_v49, %v2954_v57 }
 0x143   : > { %v874_v23 = vadd.f32 %v866_v11, %v2827_v12  ;;  %v718_v21 = vsel %vm717_vm7, %v2703_v40, %v716_v2  ;;  %v720_v38 = vand.u32 2147483648, %v2703_v40  ;;  %v856_v44 = vsel %vm688_vm6, 0.00021858087, %v3667_v39 }
 0x144   : > { %v828_v24 = vadd.f32 %v820_v36, %v812_v63  ;;  %v910_v30 = vmul.f32 %v894_v28, %v2880_v3  ;;  %v885_v62 = vmul.f32 %v869_v33, %v2917_v46  ;;  %v848_v47 = vadd.f32 %v840_v4, %v832_v25 }
 0x145   : > { %v890_v16 = vmul.f32 %v874_v23, %v2923_v14  ;;  %vm687_vm9 = vcmp.lt.f32.partialorder %v2703_v40, 5.0  ;;  %v721_v12 = vsel %vm719_vm8, %v720_v38, %v718_v21  ;;  %v880_v6 = vsel %vm688_vm6, -0.001253725, %v3668_v8 }
 0x146   : > { %v844_v15 = vmul.f32 %v828_v24, %v2982_v50  ;;  %v918_v42 = vadd.f32 %v910_v30, %v2761_v56  ;;  %v893_v63 = vadd.f32 %v885_v62, %v2875_v19  ;;  %v864_v2 = vmul.f32 %v848_v47, %v2954_v57 }
 0x147   : > { %v898_v48 = vadd.f32 %v890_v16, %v2832_v51  ;;  %v1956_v13 = vadd.f32 -2.5, %v2703_v40  ;;  %v1964_v49 = vadd.f32 -3.0, %v721_v12  ;;  %v3673_v28 = vand.u32 2147483647, %v2568_v35 }
 0x148   : > { %v852_v11 = vadd.f32 %v844_v15, %v2944_v18  ;;  %v934_v25 = vmul.f32 %v918_v42, %v2880_v3  ;;  %v909_v36 = vmul.f32 %v893_v63, %v2917_v46  ;;  %v872_v56 = vadd.f32 %v864_v2, %v856_v44 }
 0x149   : > { %v914_v19 = vmul.f32 %v898_v48, %v2923_v14  ;;  %vm3048_vm10 = vcmp.eq.f32.partialorder %v3673_v28, 1.0  ;;  %v904_v33 = vsel %vm688_vm6, -0.0041776816, %v3669_v22  ;;  %v3057_v18 = vsel %vm687_vm9, %v1956_v13, %v1964_v49 }
 0x14a   : > { %v775_v4 = vsel %vm687_vm9, 2.8102264e-08, %v3670_v55  ;;  %v868_v23 = vmul.f32 %v852_v11, %v2982_v50  ;;  %v942_v21 = vadd.f32 %v934_v25, %v2766_v26  ;;  %v917_v38 = vadd.f32 %v909_v36, %v2885_v29 }
 0x14b   : > { %v888_v24 = vmul.f32 %v872_v56, %v2954_v57  ;;  %v922_v30 = vadd.f32 %v914_v19, %v2837_v37  ;;  %v928_v62 = vsel %vm688_vm6, 0.24664073, %v3664_v52  ;;  %v783_v47 = vsel %vm687_vm9, 3.4327394e-07, %v3671_v10 }
 0x14c   : > { %v791_v16 = vmul.f32 %v775_v4, %v3057_v18  ;;  %v876_v44 = vadd.f32 %v868_v23, %v2967_v60  ;;  %v958_v26 = vmul.f32 %v942_v21, %v2880_v3  ;;  %v933_v29 = vmul.f32 %v917_v38, %v2917_v46 }
 0x14d   : > { %v896_v12 = vadd.f32 %v888_v24, %v880_v6  ;;  %v938_v15 = vmul.f32 %v922_v30, %v2923_v14  ;;  %v3676_v37 = vand.u32 2147483647, %v2566_v32  ;;  %v952_v63 = vsel %vm688_vm6, 1.5014094, %v3665_v27  ;;  %v3681_v30 = vld [vmem:[#allocation26_spill] sm:$0xff] }
 0x14e   : > { %v976_v2 = vand.u32 2147483647, %v2574_v43  ;;  %v799_v60 = vadd.f32 %v791_v16, %v783_v47  ;;  %v892_v3 = vmul.f32 %v876_v44, %v2982_v50  ;;  %v966_v48 = vadd.f32 %v958_v26, %v2778_v31 }
 0x14f   : > { %vm3080_vm11 = vcmp.eq.f32.partialorder %v3676_v37, 1.0  ;;  %v941_v6 = vadd.f32 %v933_v29, %v2890_v61  ;;  %v912_v13 = vmul.f32 %v896_v12, %v2954_v57  ;;  %v946_v49 = vadd.f32 %v938_v15, %v2842_v1  ;;  %v3684_v29 = vld [vmem:[#allocation20_spill] sm:$0xff] }
 0x150   : > { %v3094_v11 = vmul.f32 inf, %v2574_v43  ;;  %v807_v41 = vsel %vm687_vm9, -3.5233877e-06, %v3666_v5  ;;  %v815_v25 = vmul.f32 %v799_v60, %v3057_v18  ;;  %v900_v36 = vadd.f32 %v892_v3, %v2975_v58 }
 0x151   : > { %v998_v56 = vmul.f32 %v966_v48, %v2568_v35  ;;  %vm1116_vm13 = vcmask 1043456   ;;  %v957_v61 = vmul.f32 %v941_v6, %v2917_v46  ;;  %v920_v31 = vadd.f32 %v912_v13, %v904_v33 }
 0x152   : > { %v962_v19 = vmul.f32 %v946_v49, %v2923_v14  ;;  %v823_v1 = vadd.f32 %v815_v25, %v807_v41  ;;  %v831_v28 = vsel %vm687_vm9, -4.3915065e-06, %v3672_v7  ;;  %v978_v4 = vand.u32 2147483647, %v2587_v59 }
 0x153   : > { %v916_v23 = vmul.f32 %v900_v36, %v2982_v50  ;;  %v1006_v58 = vsel %vm3048_vm10, %v2684_v20, %v998_v56  ;;  %v965_v35 = vadd.f32 %v957_v61, %v2895_v34  ;;  %v936_v46 = vmul.f32 %v920_v31, %v2954_v57  ;;  %v3687_v36 = vld [vmem:[#allocation22_spill] sm:$0xff]  ;;  %v3688_v61 = vld [vmem:[#allocation19_spill] sm:$0xff] }
 0x154   : > { %v970_v33 = vadd.f32 %v962_v19, %v2847_v9  ;;  %v1014_v14 = vmul.f32 1.4142135, %v1006_v58  ;;  %vm3115_vm14 = vcmp.eq.f32.partialorder %v976_v2, 1.0  ;;  %v839_v38 = vmul.f32 %v823_v1, %v3057_v18 }
 0x155   : > { %2128 = vrsqrt.f32 %v2768_v45  ;;  %v924_v24 = vadd.f32 %v916_v23, %v2987_v0  ;;  %v997_v51 = vmul.f32 %v965_v35, %v2566_v32  ;;  %v944_v20 = vadd.f32 %v936_v46, %v928_v62  ;;  %v3689_v46 = vld [vmem:[#allocation28_spill] sm:$0xff] }
 0x156   : > { %v855_v34 = vsel %vm687_vm9, 0.00021858087, %v3667_v39  ;;  %v1002_v9 = vmul.f32 %v970_v33, %v2587_v59  ;;  %v1043_v47 = vmul.f32 %v3681_v30, %v1014_v14  ;;  %v1068_v16 = vmul.f32 0.9999999, %v1014_v14  ;;  %v3685_v59 = vld [vmem:[#allocation17_spill] sm:$0xff] }
 0x157   : > { %v847_v44 = vadd.f32 %v839_v38, %v831_v28  ;;  %v940_v26 = vmul.f32 %v924_v24, %v2982_v50  ;;  %v1005_v0 = vsel %vm3080_vm11, %v3012_v54, %v997_v51  ;;  %v960_v32 = vmul.f32 %v944_v20, %v2954_v57  ;;  %v3686_v57 = vld [vmem:[#allocation29_spill] sm:$0xff] }
 0x158   : > { %vm3133_vm15 = vcmp.eq.f32.partialorder %v978_v4, 1.0  ;;  %v1060_v12 = vadd.f32 %v3684_v29, %v1043_v47  ;;  %v1076_v15 = vsub.f32 %v3685_v59, %v1068_v16  ;;  %v1013_v37 = vmul.f32 1.4142135, %v1005_v0  ;;  %v3690_v14 = vld [vmem:[#allocation25_spill] sm:$0xff] }
 0x159   : > { %v863_v2 = vmul.f32 %v847_v44, %v3057_v18  ;;  %v948_v60 = vadd.f32 %v940_v26, %v2992_v53  ;;  %v968_v3 = vadd.f32 %v960_v32, %v952_v63  ;;  %v879_v54 = vsel %vm687_vm9, -0.001253725, %v3668_v8  ;;  %v3692_v26 = vld [vmem:[#allocation27_spill] sm:$0xff]  ;;  %v3693_v32 = vld [vmem:[#allocation21_spill] sm:$0xff] }
 0x15a   : > { %vm1109_vm0 = vcmask 64512   ;;  %v1010_v42 = vsel %vm3133_vm15, %v3686_v57, %v1002_v9  ;;  %1084 = vst [vmem:[%s3149_s18 + $0x8] sm:$0xff] %v1076_v15  ;;  %v1092_v48 = vpack.c.bf16 %v1060_v12, %v1060_v12  ;;  %v1042_v6 = vmul.f32 %v3681_v30, %v1013_v37  ;;  %v3691_v9 = vld [vmem:[#allocation24_spill] sm:$0xff] }
 0x15b   : > { %v1067_v13 = vmul.f32 0.9999999, %v1013_v37  ;;  %v871_v53 = vadd.f32 %v863_v2, %v855_v34  ;;  %v964_v63 = vmul.f32 %v948_v60, %v2982_v50  ;;  %v1000_v49 = vmul.f32 %v968_v3, %v2574_v43  ;;  %v3181_v34 = vld [vmem:[%s3573_s4] sm:$0xff]   ;;  %v3695_v2 = vld [vmem:[#allocation30_spill] sm:$0xff]  ;;  %v3696_v60 = vld [vmem:[#allocation32_spill] sm:$0xff] }
 0x15c   : > { %v903_v41 = vsel %vm687_vm9, -0.0041776816, %v3669_v22  ;;  %v1018_v25 = vmul.f32 1.4142135, %v1010_v42  ;;  %1972 = vmatprep.subr.msk.bf16.mxu0 %vm1116_vm13, %v1092_v48  ;;  %v1059_v56 = vadd.f32 %v3687_v36, %v1042_v6  ;;  %vm689_vm1 = vcmp.lt.f32.partialorder %v2768_v45, 5.0 }
 0x15d   : > { %v1075_v31 = vsub.f32 %v3688_v61, %v1067_v13  ;;  %v887_v19 = vmul.f32 %v871_v53, %v3057_v18  ;;  %v972_v50 = vadd.f32 %v964_v63, %v3002_v17  ;;  %v1008_v43 = vsel %vm3115_vm14, %v3094_v11, %v1000_v49 }
 0x15e   : > { %v1047_v1 = vmul.f32 %v3681_v30, %v1018_v25  ;;  %v1072_v28 = vmul.f32 0.9999999, %v1018_v25  ;;  %v1091_v23 = vpack.c.bf16 %v1059_v56, %v1059_v56  ;;  %v1016_v58 = vmul.f32 1.4142135, %v1008_v43 }
 0x15f   : > { %v2129_v4 = vpop.eup %2128  ;;  %1083 = vst [vmem:[%s3149_s18] sm:$0xff] %v1075_v31  ;;  %v895_v35 = vadd.f32 %v887_v19, %v879_v54  ;;  %vm731_vm2 = vcmp.eq.f32.partialorder %v2768_v45, inf  ;;  %v734_v11 = vand.u32 2147483648, %v2768_v45  ;;  %v1004_v47 = vmul.f32 %v972_v50, %v3691_v9  ;;  %v3232_v50 = vld [vmem:[%s3573_s4 + $0x8] sm:$0xff]  }
 0x160   : > { %v1064_v33 = vadd.f32 %v3689_v46, %v1047_v1  ;;  %v1080_v17 = vsub.f32 %v3690_v14, %v1072_v28  ;;  %v730_v38 = vmul.f32 %v2129_v4, %v2768_v45  ;;  %v1118_v21 = vsel %vm1116_vm13, %v1091_v23, 0  ;;  %v3700_v1 = vld [vmem:[#allocation15_spill] sm:$0xff]  ;;  %v1023_v14 = vld [vmem:[%s2535_s25 + $0x10] sm:$0xff] }
 0x161   : > { %v1045_v24 = vmul.f32 %v3681_v30, %v1016_v58  ;;  %v1070_v51 = vmul.f32 0.9999999, %v1016_v58  ;;  %v911_v20 = vmul.f32 %v895_v35, %v3057_v18  ;;  %1142 = vmatpush1.bf16.msra.mxu0 %v1118_v21  ;;  %vm733_vm3 = vcmp.eq.f32.partialorder %v2768_v45, 0.0  ;;  %v1028_v58 = vld [vmem:[%s2535_s25 + $0x38] sm:$0xff] }
 0x162   : > { %1088 = vst [vmem:[%s3149_s18 + $0x28] sm:$0xff] %v1080_v17  ;;  %v1096_v16 = vpack.c.bf16 %v1064_v33, %v1064_v33  ;;  %v732_v44 = vsel %vm731_vm2, %v2768_v45, %v730_v38  ;;  %v1958_v59 = vadd.f32 -2.5, %v2768_v45  ;;  %v3697_v3 = vsel %vm2771_vm12, %v3695_v2, %v3696_v60  ;;  %v1029_v38 = vld [vmem:[%s388_s16] sm:$0xff] }
 0x163   : > { %v1062_v0 = vadd.f32 %v3692_v26, %v1045_v24  ;;  %v1078_v62 = vsub.f32 %v3693_v32, %v1070_v51  ;;  %v919_v29 = vadd.f32 %v911_v20, %v903_v41  ;;  %v735_v12 = vsel %vm733_vm3, %v734_v11, %v732_v44  ;;  %v1030_v11 = vld [vmem:[%s388_s16 + $0x8] sm:$0xff]  ;;  %v3701_v24 = vld [vmem:[#allocation18_spill] sm:$0xff] }
 0x164   : > { %1978 = vmatprep.subr.msk.bf16.mxu0 %vm1116_vm13, %v1096_v16  ;;  %v1966_v15 = vadd.f32 -3.0, %v735_v12  ;;  %v3201_v54 = vsub.f32 0.0, %v3697_v3  ;;  %v996_v57 = vmul.f32 inf, %v3691_v9  ;;  %1973 = vmatmul.mubr.msk.bf16.vlgmr.msra.gmra.mrb[0].mxu0 %vm1109_vm0, %v3181_v34  ;;  %v927_v6 = vsel %vm687_vm9, 0.24664073, %v3664_v52  ;;  %v1032_v16 = vld [vmem:[%s388_s16 + $0x18] sm:$0xff] }
 0x165   : > { %1086 = vst [vmem:[%s3149_s18 + $0x18] sm:$0xff] %v1078_v62  ;;  %v1094_v42 = vpack.c.bf16 %v1062_v0, %v1062_v0  ;;  %v935_v48 = vmul.f32 %v919_v29, %v3057_v18  ;;  %v777_v53 = vsel %vm689_vm1, 2.8102264e-08, %v3670_v55  ;;  %v3698_v63 = vand.u32 2147483647, %v3691_v9 }
 0x166   : > { %v3213_v13 = vsel %vm689_vm1, %v1958_v59, %v1966_v15  ;;  %v3699_v49 = vmov 0   ;;  %v785_v56 = vsel %vm689_vm1, 3.4327394e-07, %v3671_v10  ;;  %2130 = vrsqrt.f32 %v3201_v54 }
 0x167   : > { %vm988_vm12 = vcmp.eq.f32.partialorder %v3698_v63, 1.0  ;;  %1183 = vmatprep.mubr.bf16.mxu0 %v3699_v49  ;;  %1975 = vmatprep.subr.msk.bf16.mxu1 %vm1116_vm13, %v1094_v42  ;;  %v943_v41 = vadd.f32 %v935_v48, %v927_v6  ;;  %v793_v25 = vmul.f32 %v777_v53, %v3213_v13  ;;  %v951_v43 = vsel %vm687_vm9, 1.5014094, %v3665_v27 }
 0x168   : > { %v1012_v36 = vsel %vm988_vm12, %v996_v57, %v1004_v47  ;;  %v975_v28 = vand.u32 2147483647, %v3700_v1  ;;  %v809_v35 = vsel %vm689_vm1, -3.5233877e-06, %v3666_v5  ;;  %v991_v40 = vmul.f32 inf, %v3700_v1  ;;  %v1031_v47 = vld [vmem:[%s388_s16 + $0x10] sm:$0xff] }
 0x169   : > { %v1020_v61 = vmul.f32 1.4142135, %v1012_v36  ;;  %v959_v31 = vmul.f32 %v943_v41, %v3057_v18  ;;  %v801_v19 = vadd.f32 %v793_v25, %v785_v56  ;;  %v1058_v51 = vmul.f32 %v3701_v24, %v1028_v58  ;;  %s2341_s16 = smov [#allocation9]  }
 0x16a   : > { %vm983_vm4 = vcmp.eq.f32.partialorder %v975_v28, 1.0  ;;  %v1053_v26 = vmul.f32 %v3701_v24, %v1023_v14  ;;  %v833_v0 = vsel %vm689_vm1, -4.3915065e-06, %v3672_v7  ;;  %v1369_v32 = vpack.c.bf16 %v1030_v11, %v1029_v38 }
 0x16b   : > { %v1074_v4 = vmul.f32 0.9999999, %v1020_v61  ;;  %v967_v18 = vadd.f32 %v959_v31, %v951_v43  ;;  %v817_v23 = vmul.f32 %v801_v19, %v3213_v13  ;;  %v1049_v21 = vmul.f32 %v3681_v30, %v1020_v61 }
 0x16c   : > { %1974 = vmatmul.mubr.msk.bf16.gmra.mrb[4].mxu0 %vm1109_vm0, %v3232_v50  ;;  %1373 = vperm.xlu0 %2096, %v1369_v32   ;;  %v1370_v15 = vpack.c.bf16 %v1032_v16, %v1031_v47  ;;  %v857_v57 = vsel %vm689_vm1, 0.00021858087, %v3667_v39  ;;  %vm745_vm5 = vcmp.eq.f32.partialorder %v3201_v54, inf  ;;  %v748_v6 = vand.u32 2147483648, %v3201_v54 }
 0x16d   : > { %v1082_v46 = vsub.f32 %v1028_v58, %v1074_v4  ;;  %v999_v33 = vmul.f32 %v967_v18, %v3700_v1  ;;  %v825_v17 = vadd.f32 %v817_v23, %v809_v35  ;;  %1279 = vmatprep.mubr.bf16.mxu0 %v3699_v49  ;;  %v1066_v59 = vadd.f32 %v1058_v51, %v1049_v21  ;;  %v3702_v51 = vld [vmem:[#allocation16_spill] sm:$0xff] }
 0x16e   : > { %vm747_vm6 = vcmp.eq.f32.partialorder %v3201_v54, 0.0  ;;  %vm691_vm7 = vcmp.lt.f32.partialorder %v3201_v54, 5.0  ;;  %v881_v61 = vsel %vm689_vm1, -0.001253725, %v3668_v8  ;;  %v1960_v31 = vadd.f32 -2.5, %v3201_v54 }
 0x16f   : > { %1090 = vst [vmem:[%s3149_s18 + $0x38] sm:$0xff] %v1082_v46  ;;  %v1007_v20 = vsel %vm983_vm4, %v991_v40, %v999_v33  ;;  %v841_v9 = vmul.f32 %v825_v17, %v3213_v13  ;;  %v1098_v63 = vpack.c.bf16 %v1066_v59, %v1066_v59  ;;  %v779_v28 = vsel %vm691_vm7, 2.8102264e-08, %v3670_v55 }
 0x170   : > { %v1015_v44 = vmul.f32 1.4142135, %v1007_v20  ;;  %v2131_v37 = vpop.eup %2130  ;;  %1378 = vperm.xlu0 %2096, %v1370_v15   ;;  %v905_v23 = vsel %vm689_vm1, -0.0041776816, %v3669_v22  ;;  %v787_v58 = vsel %vm691_vm7, 3.4327394e-07, %v3671_v10 }
 0x171   : > { %v849_v62 = vadd.f32 %v841_v9, %v833_v0  ;;  %v744_v42 = vmul.f32 %v2131_v37, %v3201_v54  ;;  %v929_v33 = vsel %vm689_vm1, 0.24664073, %v3664_v52  ;;  %v953_v21 = vsel %vm689_vm1, 1.5014094, %v3665_v27 }
 0x172   : > { %v1044_v29 = vmul.f32 %v3681_v30, %v1015_v44  ;;  %v1069_v12 = vmul.f32 0.9999999, %v1015_v44  ;;  %v977_v20 = vand.u32 2147483647, %v3702_v51  ;;  %v835_v9 = vsel %vm691_vm7, -4.3915065e-06, %v3672_v7 }
 0x173   : > { %v865_v2 = vmul.f32 %v849_v62, %v3213_v13  ;;  %v746_v41 = vsel %vm745_vm5, %v3201_v54, %v744_v42  ;;  %v1025_v44 = vld [vmem:[%s2535_s25 + $0x20] sm:$0xff]  ;;  %v883_v15 = vsel %vm691_vm7, -0.001253725, %v3668_v8  ;;  %v931_v8 = vsel %vm691_vm7, 0.24664073, %v3664_v52  ;;  %v1027_v52 = vld [vmem:[%s2535_s25 + $0x30] sm:$0xff] }
 0x174   : > { %v1061_v60 = vadd.f32 %v1053_v26, %v1044_v29  ;;  %v1077_v3 = vsub.f32 %v1023_v14, %v1069_v12  ;;  %v749_v36 = vsel %vm747_vm6, %v748_v6, %v746_v41  ;;  %v811_v14 = vsel %vm691_vm7, -3.5233877e-06, %v3666_v5  ;;  %v3703_v41 = vld [vmem:[#allocation23_spill] sm:$0xff]  ;;  %s2213_s25 = sshll.u32 %s2341_s16, 4  ;;  %s2214_s25 = int_to_ptr.vmem [resolvable:$false] %s2213_s25 }
 0x175   : > { %v873_v48 = vadd.f32 %v865_v2, %v857_v57  ;;  %v1968_v19 = vadd.f32 -3.0, %v749_v36  ;;  %vm985_vm8 = vcmp.eq.f32.partialorder %v977_v20, 1.0  ;;  %v859_v26 = vsel %vm691_vm7, 0.00021858087, %v3667_v39  ;;  %s2215_s0 = scalar_lea.vmem %s2214_s25, 2048  ;;  %p2216_p9 = scmp.lt.s32.totalorder %s1789_s20, %s2214_s25 }
 0x176   : > { %1085 = vst [vmem:[%s3149_s18 + $0x10] sm:$0xff] %v1077_v3  ;;  %v1093_v53 = vpack.c.bf16 %v1061_v60, %v1061_v60  ;;  %v1055_v62 = vmul.f32 %v3701_v24, %v1025_v44  ;;  %v907_v39 = vsel %vm691_vm7, -0.0041776816, %v3669_v22  ;;  %v955_v22 = vsel %vm691_vm7, 1.5014094, %v3665_v27  ;;  %p2217_p13 = scmp.lt.s32.totalorder %s2215_s0, %s2209_s26 }
 0x177   : > { %v889_v25 = vmul.f32 %v873_v48, %v3213_v13  ;;  %v771_v1 = vsel %vm691_vm7, %v1960_v31, %v1968_v19  ;;  %vm1546_vm10 = vcmask 261120  }
 0x178   : > { %v1124_v56 = vsel %vm1116_vm13, %v1093_v53, 0  ;;  %v795_v18 = vmul.f32 %v779_v28, %v771_v1  ;;  %p2218_p11 = por %p2217_p13, %p2216_p9 }
 0x179   : > { %1195 = vmatpush1.bf16.msra.mxu1 %v1124_v56  ;;  %v897_v43 = vadd.f32 %v889_v25, %v881_v61  ;;  %v979_v25 = vand.u32 2147483647, %v3703_v41  ;;  %v995_v56 = vmul.f32 inf, %v3703_v41 }
 0x17a   : > { %1981 = vmatprep.subr.msk.bf16.mxu1 %vm1116_vm13, %v1098_v63  ;;  %v803_v46 = vadd.f32 %v795_v18, %v787_v58  ;;  %p2219_p3 = pnand %p2218_p11, %p2212_p4 }
 0x17b   : > { %v913_v4 = vmul.f32 %v897_v43, %v3213_v13  ;;  %vm987_vm9 = vcmp.eq.f32.partialorder %v979_v25, 1.0  ;;  %v1057_v43 = vmul.f32 %v3701_v24, %v1027_v52 }
 0x17c   : > { %1976 = vmatmul.mubr.msk.bf16.vlgmr.msra.gmra.mrb[0].mxu1 %vm1109_vm0, %v3181_v34  ;;  %v819_v40 = vmul.f32 %v803_v46, %v771_v1 }
 0x17d   : > { %v921_v35 = vadd.f32 %v913_v4, %v905_v23  ;;  %1236 = vmatprep.mubr.bf16.mxu1 %v3699_v49 }
 0x17e   : > { %v827_v38 = vadd.f32 %v819_v40, %v811_v14 }
 0x17f   : > { %v937_v55 = vmul.f32 %v921_v35, %v3213_v13 }
 0x180   : > { %v843_v11 = vmul.f32 %v827_v38, %v771_v1 }
 0x181   : > { %v945_v17 = vadd.f32 %v937_v55, %v929_v33 }
 0x182   : > { %v851_v5 = vadd.f32 %v843_v11, %v835_v9 }
 0x183   : > { %v961_v10 = vmul.f32 %v945_v17, %v3213_v13  ;;  %v993_v13 = vmul.f32 inf, %v3702_v51 }
 0x184   : > { %1977 = vmatmul.mubr.msk.bf16.gmra.mrb[4].mxu1 %vm1109_vm0, %v3232_v50  ;;  %v867_v45 = vmul.f32 %v851_v5, %v771_v1 }
 0x185   : > { %v969_v47 = vadd.f32 %v961_v10, %v953_v21  ;;  %1332 = vmatprep.mubr.bf16.mxu1 %v3699_v49 }
 0x186   : > { %v875_v0 = vadd.f32 %v867_v45, %v859_v26 }
 0x187   : > { %v1001_v16 = vmul.f32 %v969_v47, %v3702_v51 }
 0x188   : > { %v891_v29 = vmul.f32 %v875_v0, %v771_v1 }
 0x189   : > { %v1009_v7 = vsel %vm985_vm8, %v993_v13, %v1001_v16 }
 0x18a   : > { %v1017_v32 = vmul.f32 1.4142135, %v1009_v7  ;;  %v899_v37 = vadd.f32 %v891_v29, %v883_v15 }
 0x18c   : > { %v1046_v12 = vmul.f32 %v3681_v30, %v1017_v32  ;;  %v1071_v59 = vmul.f32 0.9999999, %v1017_v32  ;;  %v915_v3 = vmul.f32 %v899_v37, %v771_v1 }
 0x18e   : > { %v1063_v2 = vadd.f32 %v1055_v62, %v1046_v12  ;;  %v1079_v60 = vsub.f32 %v1025_v44, %v1071_v59  ;;  %v923_v42 = vadd.f32 %v915_v3, %v907_v39 }
 0x190   : > { %1087 = vst [vmem:[%s3149_s18 + $0x20] sm:$0xff] %v1079_v60  ;;  %v1095_v57 = vpack.c.bf16 %v1063_v2, %v1063_v2  ;;  %v939_v6 = vmul.f32 %v923_v42, %v771_v1 }
 0x192   : > { %v1130_v48 = vsel %vm1116_vm13, %v1095_v57, 0  ;;  %v947_v53 = vadd.f32 %v939_v6, %v931_v8 }
 0x193   : > { %1248 = vmatpush1.bf16.msra.mxu0 %v1130_v48 }
 0x194   : > { %v963_v63 = vmul.f32 %v947_v53, %v771_v1 }
 0x196   : > { %1979 = vmatmul.mubr.msk.bf16.vlgmr.msra.gmra.mrb[8].mxu0 %vm1109_vm0, %v3181_v34  ;;  %v971_v36 = vadd.f32 %v963_v63, %v955_v22 }
 0x197   : > { %1289 = vmatprep.mubr.bf16.mxu0 %v3699_v49 }
 0x198   : > { %v1003_v61 = vmul.f32 %v971_v36, %v3703_v41 }
 0x19a   : > { %v1011_v31 = vsel %vm987_vm9, %v995_v56, %v1003_v61 }
 0x19b   : > { %v1019_v19 = vmul.f32 1.4142135, %v1011_v31 }
 0x19d   : > { %v1048_v27 = vmul.f32 %v3681_v30, %v1019_v19  ;;  %v1073_v54 = vmul.f32 0.9999999, %v1019_v19  ;;  %v1038_v30 = vld [vmem:[%s3575_s6] sm:$0xff] }
 0x19e   : > { %1980 = vmatmul.mubr.msk.bf16.gmra.mrb[12].mxu0 %vm1109_vm0, %v3232_v50  ;;  %1543 = vperm.xlu1 %2097, %v1038_v30  }
 0x19f   : > { %1582 = vmatprep.mubr.bf16.mxu0 %v3699_v49  ;;  %v1065_v1 = vadd.f32 %v1057_v43, %v1048_v27  ;;  %v1081_v28 = vsub.f32 %v1027_v52, %v1073_v54 }
 0x1a1   : > { %1089 = vst [vmem:[%s3149_s18 + $0x30] sm:$0xff] %v1081_v28  ;;  %v1097_v4 = vpack.c.bf16 %v1065_v1, %v1065_v1 }
 0x1a3   : > { %v1136_v18 = vsel %vm1116_vm13, %v1097_v4, 0 }
 0x1a4   : > { %1301 = vmatpush1.bf16.msra.mxu1 %v1136_v18 }
 0x1a7   : > { %1982 = vmatmul.mubr.msk.bf16.vlgmr.msra.gmra.mrb[8].mxu1 %vm1109_vm0, %v3181_v34 }
 0x1a8   : > { %1342 = vmatprep.mubr.bf16.mxu1 %v3699_v49 }
 0x1af   : > { %1983 = vmatmul.mubr.msk.bf16.gmra.mrb[12].mxu1 %vm1109_vm0, %v3232_v50 }
 0x1b0   : > { %1623 = vmatprep.mubr.bf16.mxu1 %v3699_v49 }
 0x1eb   : > { %v3357_v35 = vpop.permute.xlu0 %1373 }
 0x1ef   : > { %v3370_v21 = vpop.permute.xlu0 %1378 }
 0x237   : > { %v1175_v24 = vpop.f32.mrb[0].mxu0 }
 0x238   : > { %v1177_v23 = vpop.f32.mrb[1].mxu0 }
 0x239   : > { %v1179_v58 = vpop.f32.mrb[2].mxu0 }
 0x23a   : > { %v1353_v46 = vpack.c.bf16 %v1179_v58, %v1175_v24  ;;  %v1181_v55 = vpop.f32.mrb[3].mxu0 }
 0x23b   : > { %v1354_v34 = vpack.c.bf16 %v1181_v55, %v1177_v23 }
 0x23c   : > { %v3360_v40 = vadd.bf16 %v3357_v35, %v1353_v46 }
 0x23d   : > { %v3363_v50 = vadd.bf16 %v3357_v35, %v1354_v34 }
 0x23e   : > { %v1397_v33 = vmul.bf16 %v3360_v40, %v3360_v40 }
 0x23f   : > { %v1185_v14 = vpop.f32.mrb[4].mxu0  ;;  %v1398_v17 = vmul.bf16 %v3363_v50, %v3363_v50 }
 0x240   : > { %v1187_v38 = vpop.f32.mrb[5].mxu0  ;;  %v1413_v10 = vmul.bf16 %v1397_v33, %v3360_v40 }
 0x241   : > { %v1189_v11 = vpop.f32.mrb[6].mxu0  ;;  %v1414_v51 = vmul.bf16 %v1398_v17, %v3363_v50 }
 0x242   : > { %v1361_v20 = vpack.c.bf16 %v1189_v11, %v1185_v14  ;;  %v1191_v9 = vpop.f32.mrb[7].mxu0  ;;  %v1429_v47 = vmul.bf16 1027030327, %v1413_v10 }
 0x243   : > { %v1362_v5 = vpack.c.bf16 %v1191_v9, %v1187_v38  ;;  %v1430_v13 = vmul.bf16 1027030327, %v1414_v51 }
 0x244   : > { %v1445_v16 = vadd.bf16 %v1429_v47, %v3360_v40  ;;  %v3375_v44 = vadd.bf16 %v3370_v21, %v1361_v20 }
 0x245   : > { %v1446_v45 = vadd.bf16 %v1430_v13, %v3363_v50  ;;  %v3379_v26 = vadd.bf16 %v3370_v21, %v1362_v5 }
 0x246   : > { %v1461_v7 = vmul.bf16 1061961548, %v1445_v16  ;;  %v1405_v0 = vmul.bf16 %v3375_v44, %v3375_v44 }
 0x247   : > { %v1462_v32 = vmul.bf16 1061961548, %v1446_v45  ;;  %v1406_v62 = vmul.bf16 %v3379_v26, %v3379_v26 }
 0x248   : > { %2132 = vtanh.bf16 %v1461_v7  ;;  %v1421_v29 = vmul.bf16 %v1405_v0, %v3375_v44 }
 0x249   : > { %2134 = vtanh.bf16 %v1462_v32  ;;  %v1422_v12 = vmul.bf16 %v1406_v62, %v3379_v26  ;;  %v3424_v62 = vld [vmem:[%s3574_s5] sm:$0xf] }
 0x24a   : > { %v1437_v59 = vmul.bf16 1027030327, %v1421_v29 }
 0x24b   : > { %v1438_v15 = vmul.bf16 1027030327, %v1422_v12 }
 0x24c   : > { %v1453_v37 = vadd.bf16 %v1437_v59, %v3375_v44 }
 0x24d   : > { %v1454_v2 = vadd.bf16 %v1438_v15, %v3379_v26 }
 0x24e   : > { %v1469_v3 = vmul.bf16 1061961548, %v1453_v37 }
 0x24f   : > { %v1228_v60 = vpop.f32.mrb[0].mxu1  ;;  %v1470_v39 = vmul.bf16 1061961548, %v1454_v2 }
 0x250   : > { %v1230_v57 = vpop.f32.mrb[1].mxu1  ;;  %2136 = vtanh.bf16 %v1469_v3 }
 0x251   : > { %v1232_v42 = vpop.f32.mrb[2].mxu1  ;;  %2138 = vtanh.bf16 %v1470_v39 }
 0x252   : > { %v1355_v48 = vpack.c.bf16 %v1232_v42, %v1228_v60  ;;  %v1234_v6 = vpop.f32.mrb[3].mxu1 }
 0x253   : > { %v1356_v8 = vpack.c.bf16 %v1234_v6, %v1230_v57  ;;  %v2133_v53 = vpop.eup %2132 }
 0x254   : > { %v3390_v63 = vadd.bf16 %v3357_v35, %v1355_v48  ;;  %v2135_v22 = vpop.eup %2134  ;;  %v1493_v25 = vadd.bf16 1065369472, %v2133_v53 }
 0x255   : > { %v3393_v41 = vadd.bf16 %v3357_v35, %v1356_v8  ;;  %v1494_v36 = vadd.bf16 1065369472, %v2135_v22 }
 0x256   : > { %v1399_v56 = vmul.bf16 %v3390_v63, %v3390_v63  ;;  %v1509_v31 = vmul.bf16 1056980736, %v1493_v25 }
 0x257   : > { %v1400_v61 = vmul.bf16 %v3393_v41, %v3393_v41  ;;  %v1238_v52 = vpop.f32.mrb[4].mxu1  ;;  %v1510_v43 = vmul.bf16 1056980736, %v1494_v36 }
 0x258   : > { %v1240_v19 = vpop.f32.mrb[5].mxu1  ;;  %v1415_v27 = vmul.bf16 %v1399_v56, %v3390_v63  ;;  %v1525_v58 = vmul.bf16 %v1509_v31, %v3360_v40 }
 0x259   : > { %v1416_v54 = vmul.bf16 %v1400_v61, %v3393_v41  ;;  %v1242_v1 = vpop.f32.mrb[6].mxu1  ;;  %v1526_v18 = vmul.bf16 %v1510_v43, %v3363_v50 }
 0x25a   : > { %v1363_v28 = vpack.c.bf16 %v1242_v1, %v1238_v52  ;;  %v1244_v4 = vpop.f32.mrb[7].mxu1  ;;  %v1431_v30 = vmul.bf16 1027030327, %v1415_v27 }
 0x25b   : > { %v1432_v24 = vmul.bf16 1027030327, %v1416_v54  ;;  %v1364_v23 = vpack.c.bf16 %v1244_v4, %v1240_v19  ;;  %v2137_v46 = vpop.eup %2136  ;;  %1550 = vmatprep.subr.bf16.mxu0 %v1526_v18 }
 0x25c   : > { %v3404_v55 = vadd.bf16 %v3370_v21, %v1363_v28  ;;  %v1447_v34 = vadd.bf16 %v1431_v30, %v3390_v63  ;;  %v2139_v33 = vpop.eup %2138  ;;  %1551 = vmatpush1.bf16.msra.mxu0 %v1525_v58  ;;  %v1501_v50 = vadd.bf16 1065369472, %v2137_v46 }
 0x25d   : > { %v3408_v14 = vadd.bf16 %v3370_v21, %v1364_v23  ;;  %v1448_v17 = vadd.bf16 %v1432_v24, %v3393_v41  ;;  %v1502_v40 = vadd.bf16 1065369472, %v2139_v33 }
 0x25e   : > { %v1407_v38 = vmul.bf16 %v3404_v55, %v3404_v55  ;;  %v1463_v10 = vmul.bf16 1061961548, %v1447_v34  ;;  %v1517_v20 = vmul.bf16 1056980736, %v1501_v50 }
 0x25f   : > { %v1408_v11 = vmul.bf16 %v3408_v14, %v3408_v14  ;;  %v1464_v51 = vmul.bf16 1061961548, %v1448_v17  ;;  %v1518_v47 = vmul.bf16 1056980736, %v1502_v40 }
 0x260   : > { %v1423_v9 = vmul.bf16 %v1407_v38, %v3404_v55  ;;  %2140 = vtanh.bf16 %v1463_v10  ;;  %v1533_v7 = vmul.bf16 %v1517_v20, %v3375_v44 }
 0x261   : > { %v1424_v5 = vmul.bf16 %v1408_v11, %v3408_v14  ;;  %2142 = vtanh.bf16 %v1464_v51  ;;  %v1534_v16 = vmul.bf16 %v1518_v47, %v3379_v26 }
 0x262   : > { %v1439_v13 = vmul.bf16 1027030327, %v1423_v9 }
 0x263   : > { %v1440_v45 = vmul.bf16 1027030327, %v1424_v5  ;;  %1552 = vmatprep.subr.bf16.mxu0 %v1534_v16 }
 0x264   : > { %v1455_v0 = vadd.bf16 %v1439_v13, %v3404_v55  ;;  %1553 = vmatpush1.bf16.msra.mxu0 %v1533_v7 }
 0x265   : > { %v1456_v32 = vadd.bf16 %v1440_v45, %v3408_v14 }
 0x266   : > { %v1471_v29 = vmul.bf16 1061961548, %v1455_v0 }
 0x267   : > { %v1472_v12 = vmul.bf16 1061961548, %v1456_v32  ;;  %1984 = vmatmul.mubr.msk.bf16.vlgmr.msra.gmra.mrb[16].mxu0 %vm1546_vm10, %v3424_v62 }
 0x268   : > { %2144 = vtanh.bf16 %v1471_v29  ;;  %1664 = vmatprep.mubr.bf16.mxu0 %v3699_v49 }
 0x269   : > { %v1281_v26 = vpop.f32.mrb[8].mxu0  ;;  %2146 = vtanh.bf16 %v1472_v12 }
 0x26a   : > { %v1283_v44 = vpop.f32.mrb[9].mxu0 }
 0x26b   : > { %v2141_v59 = vpop.eup %2140  ;;  %v1285_v15 = vpop.f32.mrb[10].mxu0 }
 0x26c   : > { %v2143_v37 = vpop.eup %2142  ;;  %v1357_v2 = vpack.c.bf16 %v1285_v15, %v1281_v26  ;;  %v1287_v60 = vpop.f32.mrb[11].mxu0  ;;  %v1495_v3 = vadd.bf16 1065369472, %v2141_v59 }
 0x26d   : > { %v1358_v57 = vpack.c.bf16 %v1287_v60, %v1283_v44  ;;  %v1496_v39 = vadd.bf16 1065369472, %v2143_v37 }
 0x26e   : > { %v3430_v42 = vadd.bf16 %v3357_v35, %v1357_v2  ;;  %v1511_v48 = vmul.bf16 1056980736, %v1495_v3 }
 0x26f   : > { %v3433_v6 = vadd.bf16 %v3357_v35, %v1358_v57  ;;  %v1512_v8 = vmul.bf16 1056980736, %v1496_v39 }
 0x270   : > { %v1401_v53 = vmul.bf16 %v3430_v42, %v3430_v42  ;;  %v1527_v52 = vmul.bf16 %v1511_v48, %v3390_v63 }
 0x271   : > { %v1402_v22 = vmul.bf16 %v3433_v6, %v3433_v6  ;;  %v1291_v25 = vpop.f32.mrb[12].mxu0  ;;  %v1528_v36 = vmul.bf16 %v1512_v8, %v3393_v41 }
 0x272   : > { %v1417_v56 = vmul.bf16 %v1401_v53, %v3430_v42  ;;  %v1293_v61 = vpop.f32.mrb[13].mxu0 }
 0x273   : > { %v2145_v31 = vpop.eup %2144  ;;  %v1418_v19 = vmul.bf16 %v1402_v22, %v3433_v6  ;;  %v1295_v43 = vpop.f32.mrb[14].mxu0  ;;  %1591 = vmatprep.subr.bf16.mxu1 %v1528_v36 }
 0x274   : > { %v2147_v27 = vpop.eup %2146  ;;  %v1433_v54 = vmul.bf16 1027030327, %v1417_v56  ;;  %v1365_v1 = vpack.c.bf16 %v1295_v43, %v1291_v25  ;;  %v1297_v28 = vpop.f32.mrb[15].mxu0  ;;  %1592 = vmatpush1.bf16.msra.mxu1 %v1527_v52  ;;  %v1503_v4 = vadd.bf16 1065369472, %v2145_v31 }
 0x275   : > { %v1434_v18 = vmul.bf16 1027030327, %v1418_v19  ;;  %v1366_v30 = vpack.c.bf16 %v1297_v28, %v1293_v61  ;;  %v1504_v24 = vadd.bf16 1065369472, %v2147_v27 }
 0x276   : > { %v1449_v41 = vadd.bf16 %v1433_v54, %v3430_v42  ;;  %v3445_v23 = vadd.bf16 %v3370_v21, %v1365_v1  ;;  %v1519_v63 = vmul.bf16 1056980736, %v1503_v4 }
 0x277   : > { %v3448_v58 = vadd.bf16 %v3370_v21, %v1366_v30  ;;  %v1520_v46 = vmul.bf16 1056980736, %v1504_v24  ;;  %v1450_v34 = vadd.bf16 %v1434_v18, %v3433_v6 }
 0x278   : > { %v1465_v33 = vmul.bf16 1061961548, %v1449_v41  ;;  %v1409_v17 = vmul.bf16 %v3445_v23, %v3445_v23  ;;  %v1535_v11 = vmul.bf16 %v1519_v63, %v3404_v55 }
 0x279   : > { %v1410_v50 = vmul.bf16 %v3448_v58, %v3448_v58  ;;  %v1536_v38 = vmul.bf16 %v1520_v46, %v3408_v14  ;;  %v1466_v10 = vmul.bf16 1061961548, %v1450_v34 }
 0x27a   : > { %2148 = vtanh.bf16 %v1465_v33  ;;  %v1425_v40 = vmul.bf16 %v1409_v17, %v3445_v23  ;;  %v1334_v9 = vpop.f32.mrb[8].mxu1 }
 0x27b   : > { %v1426_v51 = vmul.bf16 %v1410_v50, %v3448_v58  ;;  %1593 = vmatprep.subr.bf16.mxu1 %v1536_v38  ;;  %2150 = vtanh.bf16 %v1466_v10  ;;  %v1336_v5 = vpop.f32.mrb[9].mxu1 }
 0x27c   : > { %v1441_v20 = vmul.bf16 1027030327, %v1425_v40  ;;  %1594 = vmatpush1.bf16.msra.mxu1 %v1535_v11  ;;  %v1338_v16 = vpop.f32.mrb[10].mxu1 }
 0x27d   : > { %v1442_v47 = vmul.bf16 1027030327, %v1426_v51  ;;  %v1359_v45 = vpack.c.bf16 %v1338_v16, %v1334_v9  ;;  %v1340_v7 = vpop.f32.mrb[11].mxu1 }
 0x27e   : > { %v1457_v13 = vadd.bf16 %v1441_v20, %v3445_v23  ;;  %v1360_v0 = vpack.c.bf16 %v1340_v7, %v1336_v5 }
 0x27f   : > { %1985 = vmatmul.mubr.msk.bf16.vlgmr.msra.gmra.mrb[16].mxu1 %vm1546_vm10, %v3424_v62  ;;  %v1458_v14 = vadd.bf16 %v1442_v47, %v3448_v58  ;;  %v3465_v29 = vadd.bf16 %v3357_v35, %v1359_v45 }
 0x280   : > { %v1473_v55 = vmul.bf16 1061961548, %v1457_v13  ;;  %1705 = vmatprep.mubr.bf16.mxu1 %v3699_v49  ;;  %v3468_v12 = vadd.bf16 %v3357_v35, %v1360_v0 }
 0x281   : > { %v1474_v32 = vmul.bf16 1061961548, %v1458_v14  ;;  %v1403_v26 = vmul.bf16 %v3465_v29, %v3465_v29 }
 0x282   : > { %2152 = vtanh.bf16 %v1473_v55  ;;  %v1404_v59 = vmul.bf16 %v3468_v12, %v3468_v12  ;;  %v1344_v15 = vpop.f32.mrb[12].mxu1 }
 0x283   : > { %2154 = vtanh.bf16 %v1474_v32  ;;  %v1419_v49 = vmul.bf16 %v1403_v26, %v3465_v29  ;;  %v1346_v2 = vpop.f32.mrb[13].mxu1 }
 0x284   : > { %v1420_v3 = vmul.bf16 %v1404_v59, %v3468_v12  ;;  %v1348_v57 = vpop.f32.mrb[14].mxu1 }
 0x285   : > { %v2149_v44 = vpop.eup %2148  ;;  %v1435_v35 = vmul.bf16 1027030327, %v1419_v49  ;;  %v1367_v48 = vpack.c.bf16 %v1348_v57, %v1344_v15  ;;  %v1350_v8 = vpop.f32.mrb[15].mxu1 }
 0x286   : > { %v2151_v37 = vpop.eup %2150  ;;  %v1497_v60 = vadd.bf16 1065369472, %v2149_v44  ;;  %v1436_v22 = vmul.bf16 1027030327, %v1420_v3  ;;  %v1368_v25 = vpack.c.bf16 %v1350_v8, %v1346_v2 }
 0x287   : > { %v1498_v39 = vadd.bf16 1065369472, %v2151_v37  ;;  %v1451_v56 = vadd.bf16 %v1435_v35, %v3465_v29  ;;  %v1395_v61 = vadd.bf16 %v3370_v21, %v1367_v48 }
 0x288   : > { %v1513_v53 = vmul.bf16 1056980736, %v1497_v60  ;;  %v1396_v52 = vadd.bf16 %v3370_v21, %v1368_v25  ;;  %v1452_v19 = vadd.bf16 %v1436_v22, %v3468_v12 }
 0x289   : > { %v1514_v36 = vmul.bf16 1056980736, %v1498_v39  ;;  %v1467_v43 = vmul.bf16 1061961548, %v1451_v56  ;;  %v1411_v27 = vmul.bf16 %v1395_v61, %v1395_v61 }
 0x28a   : > { %v1529_v54 = vmul.bf16 %v1513_v53, %v3430_v42  ;;  %v1412_v28 = vmul.bf16 %v1396_v52, %v1396_v52  ;;  %v1468_v4 = vmul.bf16 1061961548, %v1452_v19 }
 0x28b   : > { %v1530_v31 = vmul.bf16 %v1514_v36, %v3433_v6  ;;  %2156 = vtanh.bf16 %v1467_v43  ;;  %v1427_v30 = vmul.bf16 %v1411_v27, %v1395_v61 }
 0x28c   : > { %v1428_v41 = vmul.bf16 %v1412_v28, %v1396_v52  ;;  %2158 = vtanh.bf16 %v1468_v4 }
 0x28d   : > { %v2153_v1 = vpop.eup %2152  ;;  %1632 = vmatprep.subr.bf16.mxu0 %v1530_v31  ;;  %v1443_v63 = vmul.bf16 1027030327, %v1427_v30 }
 0x28e   : > { %v2155_v18 = vpop.eup %2154  ;;  %1633 = vmatpush1.bf16.msra.mxu0 %v1529_v54  ;;  %v1505_v24 = vadd.bf16 1065369472, %v2153_v1  ;;  %v1444_v46 = vmul.bf16 1027030327, %v1428_v41 }
 0x28f   : > { %v1506_v21 = vadd.bf16 1065369472, %v2155_v18  ;;  %v1459_v33 = vadd.bf16 %v1443_v63, %v1395_v61 }
 0x290   : > { %v1521_v6 = vmul.bf16 1056980736, %v1505_v24  ;;  %v1460_v42 = vadd.bf16 %v1444_v46, %v1396_v52 }
 0x291   : > { %v1522_v34 = vmul.bf16 1056980736, %v1506_v21  ;;  %v1475_v50 = vmul.bf16 1061961548, %v1459_v33 }
 0x292   : > { %v1537_v38 = vmul.bf16 %v1521_v6, %v3445_v23  ;;  %v1476_v10 = vmul.bf16 1061961548, %v1460_v42 }
 0x293   : > { %v1538_v17 = vmul.bf16 %v1522_v34, %v3448_v58  ;;  %2160 = vtanh.bf16 %v1475_v50 }
 0x294   : > { %2162 = vtanh.bf16 %v1476_v10 }
 0x295   : > { %1634 = vmatprep.subr.bf16.mxu0 %v1538_v17 }
 0x296   : > { %1635 = vmatpush1.bf16.msra.mxu0 %v1537_v38  ;;  %v2157_v40 = vpop.eup %2156 }
 0x297   : > { %v2159_v11 = vpop.eup %2158  ;;  %v1499_v51 = vadd.bf16 1065369472, %v2157_v40 }
 0x298   : > { %v1500_v20 = vadd.bf16 1065369472, %v2159_v11 }
 0x299   : > { %1986 = vmatmul.mubr.msk.bf16.vlgmr.msra.gmra.mrb[20].mxu0 %vm1546_vm10, %v3424_v62  ;;  %v1515_v9 = vmul.bf16 1056980736, %v1499_v51 }
 0x29a   : > { %v1516_v47 = vmul.bf16 1056980736, %v1500_v20 }
 0x29b   : > { %v1531_v23 = vmul.bf16 %v1515_v9, %v3465_v29 }
 0x29c   : > { %v1532_v58 = vmul.bf16 %v1516_v47, %v3468_v12 }
 0x29e   : > { %v2161_v5 = vpop.eup %2160  ;;  %1673 = vmatprep.subr.bf16.mxu1 %v1532_v58 }
 0x29f   : > { %v2163_v13 = vpop.eup %2162  ;;  %1674 = vmatpush1.bf16.msra.mxu1 %v1531_v23  ;;  %v1507_v16 = vadd.bf16 1065369472, %v2161_v5 }
 0x2a0   : > { %v1508_v14 = vadd.bf16 1065369472, %v2163_v13 }
 0x2a1   : > { %v1523_v45 = vmul.bf16 1056980736, %v1507_v16 }
 0x2a2   : > { %v1524_v7 = vmul.bf16 1056980736, %v1508_v14 }
 0x2a3   : > { %v1539_v0 = vmul.bf16 %v1523_v45, %v1395_v61 }
 0x2a4   : > { %v1540_v55 = vmul.bf16 %v1524_v7, %v1396_v52 }
 0x2a6   : > { %1675 = vmatprep.subr.bf16.mxu1 %v1540_v55 }
 0x2a7   : > { %1676 = vmatpush1.bf16.msra.mxu1 %v1539_v0 }
 0x2aa   : > { %1987 = vmatmul.mubr.msk.bf16.vlgmr.msra.gmra.mrb[20].mxu1 %vm1546_vm10, %v3424_v62 }
 0x2ab   : > { %2222 = shalt.err (!%p2219_p3)
}
 0x2ac   : > { %s2223_s18 = scalar_lea.hbm %s3495_s15, 1024  ;;  %s2227_s27 = scalar_lea.hbm %s3577_s8, 2048 }
 0x2ad   : > { %p2224_p7 = scmp.ne.s32.totalorder %s3495_s15, %s2223_s18  ;;  %p2228_p12 = scmp.lt.u32.totalorder %s3495_s15, %s3577_s8 }
 0x2ae   : > { %p2229_p1 = scmp.lt.u32.totalorder %s2227_s27, %s2223_s18  ;;  %p2231_p0 = scmp.lt.u32.totalorder %s2223_s18, %s3495_s15 }
 0x2af   : > { %p2225_p10 = pnand %p2224_p7, %p3704_p2 }
 0x2b0   : > { %p2230_p8 = por %p2229_p1, %p2228_p12 }
 0x2b1   : > { %p2226_p6 = pneg %p2225_p10 }
 0x2b2   : > { %p2232_p5 = por %p2231_p0, %p2230_p8 }
 0x2b4   : > { %p2233_p4 = pnand %p2232_p5, %p2226_p6 }
 0x2b6   : > { %2236 = shalt.err (!%p2233_p4)
}
 0x2b7   : > { %2015 = dma.vmem_to_hbm [thread:$0]  (%p3704_p2), %s1789_s20, 1024, %s3495_s15, %s1756_s24   ;;  %v1544_v62 = vpop.permute.xlu1 %1543 }
 0x2b8   : > { %s1942_s26 = sshll.u32 %s2529_s1, 5  ;;  %s2006_s20 = sshll.u32 %s2319_s10, 9 }
 0x2b9   : > { %s375_s16 = scalar_lea.vmem [#allocation8], %s1942_s26  ;;  %s3520_s0 = scalar_lea.hbm %s3576_s7, %s2006_s20 }
 0x2ba   : > { %s1772_s15 = sshll.u32 %s375_s16, 4  ;;  %s1751_s18 = scalar_lea.sflag [#allocation5], %s2529_s1  ;;  %s3522_s15 = int_to_ptr.vmem [resolvable:$true] %s1772_s15 }
 0x2bb   : > { %s2237_s19 = scalar_lea.vmem %s3522_s15, 512  ;;  %s2342_s10 = smov [#allocation8]  }
 0x2bc   : > { %p2238_p9 = scmp.ne.s32.totalorder %s3522_s15, %s2237_s19  ;;  %s2241_s22 = sshll.u32 %s2342_s10, 4  ;;  %s2242_s22 = int_to_ptr.vmem [resolvable:$false] %s2241_s22 }
 0x2bd   : > { %s2243_s27 = scalar_lea.vmem %s2242_s22, 1024  ;;  %p2244_p3 = scmp.lt.s32.totalorder %s3522_s15, %s2242_s22 }
 0x2be   : > { %p2239_p13 = pnand %p2238_p9, %p3704_p2  ;;  %p2245_p7 = scmp.lt.s32.totalorder %s2243_s27, %s2237_s19 }
 0x2c0   : > { %p2240_p11 = pneg %p2239_p13  ;;  %p2246_p10 = por %p2245_p7, %p2244_p3 }
 0x2c2   : > { %p2247_p6 = pnand %p2246_p10, %p2240_p11 }
 0x33a   : > { %v1584_v32 = vpop.f32.mrb[16].mxu0 }
 0x33b   : > { %v1586_v29 = vpop.f32.mrb[17].mxu0  ;;  %v1585_v12 = vadd.f32 %v1584_v32, %v1544_v62 }
 0x33c   : > { %v1588_v26 = vpop.f32.mrb[18].mxu0  ;;  %v1587_v44 = vadd.f32 %v1586_v29, %v1544_v62 }
 0x33d   : > { %v1589_v59 = vpop.f32.mrb[19].mxu0 }
 0x33e   : > { %v2002_v15 = vpack.c.bf16 %v1587_v44, %v1585_v12 }
 0x340   : > { %1746 = vst [vmem:[%s375_s16] sm:$0xff] %v2002_v15 }
 0x352   : > { %v1625_v37 = vpop.f32.mrb[16].mxu1 }
 0x353   : > { %v1627_v49 = vpop.f32.mrb[17].mxu1  ;;  %v1626_v2 = vadd.f32 %v1625_v37, %v1544_v62 }
 0x354   : > { %v1629_v60 = vpop.f32.mrb[18].mxu1  ;;  %v1628_v3 = vadd.f32 %v1627_v49, %v1544_v62 }
 0x355   : > { %v1630_v57 = vpop.f32.mrb[19].mxu1 }
 0x356   : > { %v2003_v39 = vpack.c.bf16 %v1628_v3, %v1626_v2 }
 0x358   : > { %1747 = vst [vmem:[%s375_s16 + $0x8] sm:$0xff] %v2003_v39 }
 0x36c   : > { %v1666_v35 = vpop.f32.mrb[20].mxu0 }
 0x36d   : > { %v1667_v48 = vadd.f32 %v1666_v35, %v1544_v62  ;;  %v1668_v8 = vpop.f32.mrb[21].mxu0 }
 0x36e   : > { %v1669_v53 = vadd.f32 %v1668_v8, %v1544_v62  ;;  %v1670_v22 = vpop.f32.mrb[22].mxu0 }
 0x36f   : > { %v1671_v25 = vpop.f32.mrb[23].mxu0 }
 0x370   : > { %v2004_v36 = vpack.c.bf16 %v1669_v53, %v1667_v48 }
 0x372   : > { %1748 = vst [vmem:[%s375_s16 + $0x10] sm:$0xff] %v2004_v36 }
 0x37d   : > { %v1707_v56 = vpop.f32.mrb[20].mxu1 }
 0x37e   : > { %v1708_v61 = vadd.f32 %v1707_v56, %v1544_v62  ;;  %v1709_v52 = vpop.f32.mrb[21].mxu1 }
 0x37f   : > { %v1710_v31 = vadd.f32 %v1709_v52, %v1544_v62  ;;  %v1711_v19 = vpop.f32.mrb[22].mxu1 }
 0x380   : > { %v1712_v43 = vpop.f32.mrb[23].mxu1 }
 0x381   : > { %v2005_v27 = vpack.c.bf16 %v1710_v31, %v1708_v61 }
 0x383   : > { %1749 = vst [vmem:[%s375_s16 + $0x18] sm:$0xff] %v2005_v27 }
 0x384   : > { %2250 = shalt.err (!%p2247_p6)
}
 0x385   : > { %s2251_s1 = scalar_lea.hbm %s3520_s0, 512  ;;  %s2255_s26 = scalar_lea.hbm %s3576_s7, 1024 }
 0x386   : > { %p2252_p12 = scmp.ne.s32.totalorder %s3520_s0, %s2251_s1  ;;  %p2256_p0 = scmp.lt.u32.totalorder %s3520_s0, %s3576_s7 }
 0x387   : > { %p2257_p5 = scmp.lt.u32.totalorder %s2255_s26, %s2251_s1  ;;  %p2259_p9 = scmp.lt.u32.totalorder %s2251_s1, %s3520_s0 }
 0x388   : > { %p2253_p1 = pnand %p2252_p12, %p3704_p2 }
 0x389   : > { %p2258_p4 = por %p2257_p5, %p2256_p0 }
 0x38a   : > { %p2254_p8 = pneg %p2253_p1 }
 0x38b   : > { %p2260_p13 = por %p2259_p9, %p2258_p4 }
 0x38d   : > { %p2261_p11 = pnand %p2260_p13, %p2254_p8 }
 0x38f   : > { %2264 = shalt.err (!%p2261_p11)
}
 0x390   : > { %2014 = dma.vmem_to_hbm [thread:$0]  (%p3704_p2), %s3522_s15, 512, %s3520_s0, %s1751_s18  }
 0x391 PF: > { %s1800_s24 = sand.u32 1, %s2307_s29   ;;  %p3705_p3 = scmp.ne.s32.totalorder %s3624_s17, 0 }
 0x392   : > { %p3706_p7 = scmp.ge.s32.totalorder %s2327_s12, 2  ;;  %s1801_s25 = scalar_lea.sflag [#allocation5], %s1800_s24 }
 0x394   : > { %p2027_p10 = pnand %p3706_p7, %p3705_p3 }
 0x396   : > { %2298 = dma.done.wait (!%p2027_p10), %s1801_s25, 512  }
 0x397   : > { %2300 = vsyncadd (!%p2027_p10), %s1801_s25, 4294966784  ;;  %s1810_s19 = scalar_lea.sflag [#allocation10], %s1800_s24 }
 0x398   : > { %2302 = dma.done.wait (!%p2027_p10), %s1810_s19, 1024  }
 0x399   : > { %2304 = vsyncadd (!%p2027_p10), %s1810_s19, 4294966272  ;;  %s30_s12 = sadd.s32 1, %s2327_s12   ;;  %s3707_s29 = smov %s2311_s30 }
 0x39a   : > { %p27_p6 = scmp.ge.s32.totalorder %s30_s12, 4   ;;  %s3708_s30 = smov %s2315_s9 }
 0x39b   : > { %s3709_s9 = smov %s2483_s13  ;;  %s3710_s10 = smov %s2323_s11 }
 0x39c   : > { %s3711_s11 = smov %s3713_s23  ;;  %29 = sbr.rel (!%p27_p6) target bundleno = 12 (0xc), region = 118 }
 0x3a3   :  { %1815 = vsyncpa [#allocation4], 1 }
 0x3a4   :  { %1817 = vsyncpa [#allocation4 + $0x1], 1 }
 0x3a5   :  { %1818 = vsyncpa [#allocation5], 1 }
 0x3a6   :  { %1820 = vsyncpa [#allocation5 + $0x1], 1 }
 0x3a7   :  { %1821 = vsyncpa [#allocation10], 1 }
 0x3a8   :  { %1823 = vsyncpa [#allocation10 + $0x1], 1 }
 0x3a9   :  { %1824 = vsyncpa [#allocation6], 1 }
 0x3aa   :  { %1826 = vsyncpa [#allocation6 + $0x1], 1 }

</bundles_post_ra>
